<compile_context>
chip_gen: v6e
topology: v6e:2x2x1
jax: 0.10.0
libtpu: 0.0.40
codegen_flags: <defaults>
</compile_context>

<pallas_src>
import numpy as np
import jax
import jax.numpy as jnp
from jax import lax
from jax.experimental import pallas as pl
from jax.experimental.pallas import tpu as pltpu

# ----------------------------- configuration --------------------------------
INC = 8                      # channels ("inc" in the PyTorch module)
K1, K2, DIL = 5, 7, 3
P1 = K1 // 2                 # 2   (padding of the 5x5 depthwise conv)
P2 = (K2 // 2) * DIL         # 9   (padding of the dilated 7x7 depthwise conv)
H = W = 16
N = 2
C3 = 3 * INC                 # channels after the concat
GROUPS = 4
REDUCTION = 16
CR = C3 // REDUCTION         # 1 hidden channel in the CALayer
LANES = W * INC              # 128 : fused (W, C) lane dimension
HALO1 = 8                    # sublane-aligned halo for the 5x5 conv (>= P1)
HALO2 = 16                   # sublane-aligned halo for the dilated 7x7 (>= P2)


# ------------------------------- the kernel ---------------------------------
def _lka_kernel(x_ref, w1m_ref, b1t_ref, w2m_ref, b2t_ref,
                caw1t_ref, cab1_ref, caw2t_ref, cab2t_ref,
                wcc_ref, bcct_ref, out_ref):
    """One batch element per grid step, fused (H, W*C) = (16, 128) layout.

    x_ref    : (1, H, 128)          input tile (lanes = w*8 + c)
    w1m_ref  : (25, 128)            5x5 dw weights, pre-tiled + W-boundary masked
    w2m_ref  : (49, 128)            dilated 7x7 dw weights, pre-tiled + masked
    b1t/b2t/bcct : (1, 128)         per-channel biases tiled to 128 lanes
    caw1t    : (3, 128)             CA squeeze weights (scaled by 1/(H*W))
    cab1     : (1, 1)               CA squeeze bias
    caw2t/cab2t : (3, 128)          CA excite weights / bias, tiled
    wcc_ref  : (3, 128, 128)        grouped 1x1 conv as block-replicated matmul
    out_ref  : (1, H, 128)
    """
    f32 = jnp.float32
    u = x_ref[0]                                            # (16, 128)

    # ---- depthwise 5x5 conv, padding=2 -------------------------------------
    zp1 = jnp.zeros((HALO1, LANES), f32)
    xh = jnp.concatenate([zp1, u, zp1], axis=0)             # (32, 128), data @ [8:24]
    attn1 = jnp.zeros((H, LANES), f32)
    for j in range(K1):                                     # kernel column
        dj = j - P1                                         # W offset
        xr = xh if dj == 0 else pltpu.roll(xh, (-dj * INC) % LANES, axis=1)
        for i in range(K1):                                 # kernel row
            start = HALO1 + i - P1                          # 6 + i
            attn1 = attn1 + xr[start:start + H, :] * w1m_ref[i * K1 + j, :]
    attn1 = attn1 + b1t_ref[...]

    # ---- depthwise 7x7 conv, dilation=3, padding=9, applied to attn1 -------
    zp2 = jnp.zeros((HALO2, LANES), f32)
    ah = jnp.concatenate([zp2, attn1, zp2], axis=0)         # (48, 128), data @ [16:32]
    attn2 = jnp.zeros((H, LANES), f32)
    for j in range(K2):
        dj = (j - K2 // 2) * DIL
        ar = ah if dj == 0 else pltpu.roll(ah, (-dj * INC) % LANES, axis=1)
        for i in range(K2):
            di = (i - K2 // 2) * DIL
            start = HALO2 + di                              # 7 + 3*i
            attn2 = attn2 + ar[start:start + H, :] * w2m_ref[i * K2 + j, :]
    attn2 = attn2 + b2t_ref[...]

    # ---- CALayer on cat([attn1, attn2, u]) ----------------------------------
    # squeeze: global average pool + 1x1 conv (24 -> 1) + ReLU  (scalar z)
    t = (attn1 * caw1t_ref[0, :] + attn2 * caw1t_ref[1, :] + u * caw1t_ref[2, :])
    zsum = jnp.sum(jnp.sum(t, axis=1, keepdims=True), axis=0, keepdims=True)
    z = jnp.maximum(zsum + cab1_ref[...], 0.0)              # (1, 1)

    # excite: 1x1 conv (1 -> 24) + sigmoid, pre-tiled to 128 lanes
    s0 = 1.0 / (1.0 + jnp.exp(-(z * caw2t_ref[0:1, :] + cab2t_ref[0:1, :])))
    s1 = 1.0 / (1.0 + jnp.exp(-(z * caw2t_ref[1:2, :] + cab2t_ref[1:2, :])))
    s2 = 1.0 / (1.0 + jnp.exp(-(z * caw2t_ref[2:3, :] + cab2t_ref[2:3, :])))

    # ---- grouped 1x1 conv as 3 block-replicated MXU matmuls, fused output ---
    mixed = jnp.dot(attn1 * s0, wcc_ref[0], preferred_element_type=f32)
    mixed = mixed + jnp.dot(attn2 * s1, wcc_ref[1], preferred_element_type=f32)
    mixed = mixed + jnp.dot(u * s2, wcc_ref[2], preferred_element_type=f32)
    mixed = mixed + bcct_ref[...]

    out_ref[0, :, :] = u * mixed                            # single lane-dense store


# ------------------------------ the wrapper ----------------------------------
@jax.jit
def lka_pallas(x_nchw, kp):
    n = x_nchw.shape[0]
    # NCHW -> fused (N, H, W*C) lane-dense layout (layout glue only)
    x = jnp.transpose(x_nchw, (0, 2, 3, 1)).astype(jnp.float32)
    x = x.reshape(n, H, LANES)
    out = pl.pallas_call(
        _lka_kernel,
        out_shape=jax.ShapeDtypeStruct((n, H, LANES), jnp.float32),
        grid_spec=pltpu.PrefetchScalarGridSpec(
            num_scalar_prefetch=0,
            grid=(n,),
            in_specs=[
                pl.BlockSpec((1, H, LANES), lambda b: (b, 0, 0)),
                pl.BlockSpec((K1 * K1, LANES), lambda b: (0, 0)),
                pl.BlockSpec((1, LANES), lambda b: (0, 0)),
                pl.BlockSpec((K2 * K2, LANES), lambda b: (0, 0)),
                pl.BlockSpec((1, LANES), lambda b: (0, 0)),
                pl.BlockSpec((3, LANES), lambda b: (0, 0)),
                pl.BlockSpec((1, 1), lambda b: (0, 0)),
                pl.BlockSpec((3, LANES), lambda b: (0, 0)),
                pl.BlockSpec((3, LANES), lambda b: (0, 0)),
                pl.BlockSpec((3, LANES, LANES), lambda b: (0, 0, 0)),
                pl.BlockSpec((1, LANES), lambda b: (0, 0)),
            ],
            out_specs=pl.BlockSpec((1, H, LANES), lambda b: (b, 0, 0)),
        ),
        compiler_params=pltpu.CompilerParams(
            dimension_semantics=("parallel",)),     # v7x: one batch per core
    )(x, kp['w1m'], kp['b1t'], kp['w2m'], kp['b2t'],
      kp['caw1t'], kp['cab1'], kp['caw2t'], kp['cab2t'],
      kp['wccb'], kp['bcct'])
    out = out.reshape(n, H, W, INC)
    return jnp.transpose(out, (0, 3, 1, 2))                 # NCHW


# -------------------------- parameter construction ---------------------------
def _weight_norm(key, shape, scale=0.2):
    """Emulate torch weight_norm: w = g * v / ||v|| (norm over dims != 0)."""
    kv, kg = jax.random.split(key)
    v = jax.random.normal(kv, shape, jnp.float32) * scale
    g = jax.random.uniform(kg, (shape[0],), jnp.float32, minval=0.5, maxval=1.5)
    norm = jnp.sqrt(jnp.sum(v * v, axis=tuple(range(1, len(shape))),
                            keepdims=True))
    return (g.reshape((shape[0],) + (1,) * (len(shape) - 1)) / norm) * v


def init_params(key):
    ks = jax.random.split(key, 10)
    p = {}
    p['w1'] = _weight_norm(ks[0], (INC, 1, K1, K1))          # conv
    p['b1'] = jax.random.normal(ks[1], (INC,), jnp.float32) * 0.1
    p['w2'] = _weight_norm(ks[2], (INC, 1, K2, K2))          # conv_spatial
    p['b2'] = jax.random.normal(ks[3], (INC,), jnp.float32) * 0.1
    p['wcc'] = _weight_norm(ks[4], (INC, C3 // GROUPS, 1, 1))
    p['bcc'] = jax.random.normal(ks[5], (INC,), jnp.float32) * 0.1
    p['caw1'] = jax.random.normal(ks[6], (CR, C3, 1, 1), jnp.float32) * 0.2
    p['cab1'] = jax.random.normal(ks[7], (CR,), jnp.float32) * 0.1
    p['caw2'] = jax.random.normal(ks[8], (C3, CR, 1, 1), jnp.float32) * 0.2
    p['cab2'] = jax.random.normal(ks[9], (C3,), jnp.float32) * 0.1
    return p


def pack_params(p):
    """Reshape PyTorch-layout weights into the kernel's lane-dense layouts."""
    w1_np = np.asarray(p['w1'])[:, 0]                        # (INC, K1, K1)
    w2_np = np.asarray(p['w2'])[:, 0]                        # (INC, K2, K2)

    # depthwise taps: tiled to 128 lanes, zeroed where w + dj is out of range
    w1m = np.zeros((K1 * K1, LANES), np.float32)
    for i in range(K1):
        for j in range(K1):
            dj = j - P1
            for w in range(W):
                if 0 <= w + dj < W:
                    w1m[i * K1 + j, w * INC:(w + 1) * INC] = w1_np[:, i, j]

    w2m = np.zeros((K2 * K2, LANES), np.float32)
    for i in range(K2):
        for j in range(K2):
            dj = (j - K2 // 2) * DIL
            for w in range(W):
                if 0 <= w + dj < W:
                    w2m[i * K2 + j, w * INC:(w + 1) * INC] = w2_np[:, i, j]

    def tile_c(v):                                           # (INC,) -> (1, 128)
        return np.tile(np.asarray(v, np.float32).reshape(INC), W).reshape(1, LANES)

    b1t, b2t, bcct = tile_c(p['b1']), tile_c(p['b2']), tile_c(p['bcc'])

    caw1_np = np.asarray(p['caw1'])[0, :, 0, 0]              # (C3,)
    caw1t = (np.tile(caw1_np.reshape(3, INC), (1, W)) / float(H * W)).astype(np.float32)
    cab1 = np.asarray(p['cab1'], np.float32).reshape(1, 1)
    caw2_np = np.asarray(p['caw2'])[:, 0, 0, 0]              # (C3,)
    caw2t = np.tile(caw2_np.reshape(3, INC), (1, W)).astype(np.float32)
    cab2t = np.tile(np.asarray(p['cab2'], np.float32).reshape(3, INC), (1, W))

    # grouped 1x1 conv -> dense (C3, INC) block-diagonal, then block-replicated
    # to (3, 128, 128) so it runs as one matmul per chunk in the fused layout.
    in_pg, out_pg = C3 // GROUPS, INC // GROUPS
    dense = np.zeros((C3, INC), np.float32)
    wcc_np = np.asarray(p['wcc'])[:, :, 0, 0]                # (INC, in_pg)
    for o in range(INC):
        g = o // out_pg
        dense[g * in_pg:(g + 1) * in_pg, o] = wcc_np[o]
    wccb = np.zeros((3, LANES, LANES), np.float32)
    for k in range(3):
        blk = dense[k * INC:(k + 1) * INC, :]                # (INC, INC)
        for w in range(W):
            wccb[k, w * INC:(w + 1) * INC, w * INC:(w + 1) * INC] = blk

    return dict(w1m=jnp.asarray(w1m), b1t=jnp.asarray(b1t),
                w2m=jnp.asarray(w2m), b2t=jnp.asarray(b2t),
                caw1t=jnp.asarray(caw1t), cab1=jnp.asarray(cab1),
                caw2t=jnp.asarray(caw2t), cab2t=jnp.asarray(cab2t),
                wccb=jnp.asarray(wccb), bcct=jnp.asarray(bcct))


# ---------------------------- pure-JAX reference -----------------------------
def lka_reference(x, p):
    dn = ('NCHW', 'OIHW', 'NCHW')
    attn1 = lax.conv_general_dilated(
        x, p['w1'], (1, 1), ((P1, P1), (P1, P1)), dimension_numbers=dn,
        feature_group_count=INC) + p['b1'][None, :, None, None]
    attn2 = lax.conv_general_dilated(
        attn1, p['w2'], (1, 1), ((P2, P2), (P2, P2)), rhs_dilation=(DIL, DIL),
        dimension_numbers=dn,
        feature_group_count=INC) + p['b2'][None, :, None, None]
    attn = jnp.concatenate([attn1, attn2, x], axis=1)
    y = jnp.mean(attn, axis=(2, 3))                                   # (N, C3)
    z = jnp.maximum(y @ p['caw1'][:, :, 0, 0].T + p['cab1'][None, :], 0.0)
    s = jax.nn.sigmoid(z @ p['caw2'][:, :, 0, 0].T + p['cab2'][None, :])
    attn = attn * s[:, :, None, None]
    cc = lax.conv_general_dilated(
        attn, p['wcc'], (1, 1), ((0, 0), (0, 0)), dimension_numbers=dn,
        feature_group_count=GROUPS) + p['bcc'][None, :, None, None]
    return x * cc


# ----------------------------------- main ------------------------------------
if __name__ == "__main__":
    key = jax.random.PRNGKey(0)
    kx, kparam = jax.random.split(key)
    x = jax.random.normal(kx, (N, INC, H, W), jnp.float32)     # NCHW input

    params = init_params(kparam)
    kparams = pack_params(params)

    out = lka_pallas(x, kparams)
    out = jax.block_until_ready(out)

    ref = lka_reference(x, params)
    assert out.shape == (N, INC, H, W)
    assert bool(jnp.allclose(out, ref, rtol=2e-2, atol=2e-2)), (
        "mismatch vs reference: max abs err = "
        f"{float(jnp.max(jnp.abs(out - ref)))}")
    print("KERNEL_OK")
</pallas_src>

<mosaic_0001>
module attributes {stable_mosaic.version = 11 : i64} {
  func.func @_lka_kernel(%arg0: i32, %arg1: memref<1x16x128xf32, #tpu.memory_space<vmem>>, %arg2: memref<25x128xf32, #tpu.memory_space<vmem>>, %arg3: memref<1x128xf32, #tpu.memory_space<vmem>>, %arg4: memref<49x128xf32, #tpu.memory_space<vmem>>, %arg5: memref<1x128xf32, #tpu.memory_space<vmem>>, %arg6: memref<3x128xf32, #tpu.memory_space<vmem>>, %arg7: memref<1x1xf32, #tpu.memory_space<vmem>>, %arg8: memref<3x128xf32, #tpu.memory_space<vmem>>, %arg9: memref<3x128xf32, #tpu.memory_space<vmem>>, %arg10: memref<3x128x128xf32, #tpu.memory_space<vmem>>, %arg11: memref<1x128xf32, #tpu.memory_space<vmem>>, %arg12: memref<1x16x128xf32, #tpu.memory_space<vmem>>) attributes {dimension_semantics = [#tpu.dimension_semantics<parallel>], iteration_bounds = array<i64: 2>, scalar_prefetch = 0 : i64, scratch_operands = 0 : i64, tpu.core_type = #tpu.core_type<tc>, window_params = [{transform_indices = @transform_0, window_bounds = array<i64: 1, 16, 128>}, {pipeline_mode = #tpu.pipeline_mode<synchronous>, transform_indices = @transform_1, window_bounds = array<i64: 25, 128>}, {pipeline_mode = #tpu.pipeline_mode<synchronous>, transform_indices = @transform_2, window_bounds = array<i64: 1, 128>}, {pipeline_mode = #tpu.pipeline_mode<synchronous>, transform_indices = @transform_3, window_bounds = array<i64: 49, 128>}, {pipeline_mode = #tpu.pipeline_mode<synchronous>, transform_indices = @transform_4, window_bounds = array<i64: 1, 128>}, {pipeline_mode = #tpu.pipeline_mode<synchronous>, transform_indices = @transform_5, window_bounds = array<i64: 3, 128>}, {pipeline_mode = #tpu.pipeline_mode<synchronous>, transform_indices = @transform_6, window_bounds = array<i64: 1, 1>}, {pipeline_mode = #tpu.pipeline_mode<synchronous>, transform_indices = @transform_7, window_bounds = array<i64: 3, 128>}, {pipeline_mode = #tpu.pipeline_mode<synchronous>, transform_indices = @transform_8, window_bounds = array<i64: 3, 128>}, {pipeline_mode = #tpu.pipeline_mode<synchronous>, transform_indices = @transform_9, window_bounds = array<i64: 3, 128, 128>}, {pipeline_mode = #tpu.pipeline_mode<synchronous>, transform_indices = @transform_10, window_bounds = array<i64: 1, 128>}, {transform_indices = @transform_11, window_bounds = array<i64: 1, 16, 128>}]} {
    %c0 = arith.constant 0 : index
    %c0_0 = arith.constant 0 : index
    %c0_1 = arith.constant 0 : index
    %0 = vector.load %arg1[%c0, %c0_0, %c0_1] : memref<1x16x128xf32, #tpu.memory_space<vmem>>, vector<1x16x128xf32>
    %1 = vector.shape_cast %0 : vector<1x16x128xf32> to vector<16x128xf32>
    %cst = arith.constant 0.000000e+00 : f32
    %2 = vector.broadcast %cst : f32 to vector<8x128xf32>
    %3 = tpu.concatenate %2, %1, %2 in 0 : vector<8x128xf32>, vector<16x128xf32>, vector<8x128xf32> -> vector<32x128xf32>
    %cst_2 = arith.constant 0.000000e+00 : f32
    %4 = vector.broadcast %cst_2 : f32 to vector<16x128xf32>
    %c16_i32 = arith.constant 16 : i32
    %5 = tpu.dynamic_rotate %3 by %c16_i32 dim 1 : vector<32x128xf32>, i32 -> vector<32x128xf32>
    %6 = vector.extract_strided_slice %5 {offsets = [6, 0], sizes = [16, 128], strides = [1, 1]} : vector<32x128xf32> to vector<16x128xf32>
    %c0_3 = arith.constant 0 : index
    %c0_4 = arith.constant 0 : index
    %7 = vector.load %arg2[%c0_3, %c0_4] : memref<25x128xf32, #tpu.memory_space<vmem>>, vector<1x128xf32>
    %8 = vector.shape_cast %7 : vector<1x128xf32> to vector<128xf32>
    %9 = vector.shape_cast %8 : vector<128xf32> to vector<1x128xf32>
    %10 = vector.broadcast %9 : vector<1x128xf32> to vector<16x128xf32>
    %11 = arith.mulf %6, %10 : vector<16x128xf32>
    %12 = arith.addf %4, %11 : vector<16x128xf32>
    %13 = vector.extract_strided_slice %5 {offsets = [7, 0], sizes = [16, 128], strides = [1, 1]} : vector<32x128xf32> to vector<16x128xf32>
    %c5 = arith.constant 5 : index
    %c0_5 = arith.constant 0 : index
    %14 = vector.load %arg2[%c5, %c0_5] : memref<25x128xf32, #tpu.memory_space<vmem>>, vector<1x128xf32>
    %15 = vector.shape_cast %14 : vector<1x128xf32> to vector<128xf32>
    %16 = vector.shape_cast %15 : vector<128xf32> to vector<1x128xf32>
    %17 = vector.broadcast %16 : vector<1x128xf32> to vector<16x128xf32>
    %18 = arith.mulf %13, %17 : vector<16x128xf32>
    %19 = arith.addf %12, %18 : vector<16x128xf32>
    %20 = vector.extract_strided_slice %5 {offsets = [8, 0], sizes = [16, 128], strides = [1, 1]} : vector<32x128xf32> to vector<16x128xf32>
    %c10 = arith.constant 10 : index
    %c0_6 = arith.constant 0 : index
    %21 = vector.load %arg2[%c10, %c0_6] : memref<25x128xf32, #tpu.memory_space<vmem>>, vector<1x128xf32>
    %22 = vector.shape_cast %21 : vector<1x128xf32> to vector<128xf32>
    %23 = vector.shape_cast %22 : vector<128xf32> to vector<1x128xf32>
    %24 = vector.broadcast %23 : vector<1x128xf32> to vector<16x128xf32>
    %25 = arith.mulf %20, %24 : vector<16x128xf32>
    %26 = arith.addf %19, %25 : vector<16x128xf32>
    %27 = vector.extract_strided_slice %5 {offsets = [9, 0], sizes = [16, 128], strides = [1, 1]} : vector<32x128xf32> to vector<16x128xf32>
    %c15 = arith.constant 15 : index
    %c0_7 = arith.constant 0 : index
    %28 = vector.load %arg2[%c15, %c0_7] : memref<25x128xf32, #tpu.memory_space<vmem>>, vector<1x128xf32>
    %29 = vector.shape_cast %28 : vector<1x128xf32> to vector<128xf32>
    %30 = vector.shape_cast %29 : vector<128xf32> to vector<1x128xf32>
    %31 = vector.broadcast %30 : vector<1x128xf32> to vector<16x128xf32>
    %32 = arith.mulf %27, %31 : vector<16x128xf32>
    %33 = arith.addf %26, %32 : vector<16x128xf32>
    %34 = vector.extract_strided_slice %5 {offsets = [10, 0], sizes = [16, 128], strides = [1, 1]} : vector<32x128xf32> to vector<16x128xf32>
    %c20 = arith.constant 20 : index
    %c0_8 = arith.constant 0 : index
    %35 = vector.load %arg2[%c20, %c0_8] : memref<25x128xf32, #tpu.memory_space<vmem>>, vector<1x128xf32>
    %36 = vector.shape_cast %35 : vector<1x128xf32> to vector<128xf32>
    %37 = vector.shape_cast %36 : vector<128xf32> to vector<1x128xf32>
    %38 = vector.broadcast %37 : vector<1x128xf32> to vector<16x128xf32>
    %39 = arith.mulf %34, %38 : vector<16x128xf32>
    %40 = arith.addf %33, %39 : vector<16x128xf32>
    %c8_i32 = arith.constant 8 : i32
    %41 = tpu.dynamic_rotate %3 by %c8_i32 dim 1 : vector<32x128xf32>, i32 -> vector<32x128xf32>
    %42 = vector.extract_strided_slice %41 {offsets = [6, 0], sizes = [16, 128], strides = [1, 1]} : vector<32x128xf32> to vector<16x128xf32>
    %c1 = arith.constant 1 : index
    %c0_9 = arith.constant 0 : index
    %43 = vector.load %arg2[%c1, %c0_9] : memref<25x128xf32, #tpu.memory_space<vmem>>, vector<1x128xf32>
    %44 = vector.shape_cast %43 : vector<1x128xf32> to vector<128xf32>
    %45 = vector.shape_cast %44 : vector<128xf32> to vector<1x128xf32>
    %46 = vector.broadcast %45 : vector<1x128xf32> to vector<16x128xf32>
    %47 = arith.mulf %42, %46 : vector<16x128xf32>
    %48 = arith.addf %40, %47 : vector<16x128xf32>
    %49 = vector.extract_strided_slice %41 {offsets = [7, 0], sizes = [16, 128], strides = [1, 1]} : vector<32x128xf32> to vector<16x128xf32>
    %c6 = arith.constant 6 : index
    %c0_10 = arith.constant 0 : index
    %50 = vector.load %arg2[%c6, %c0_10] : memref<25x128xf32, #tpu.memory_space<vmem>>, vector<1x128xf32>
    %51 = vector.shape_cast %50 : vector<1x128xf32> to vector<128xf32>
    %52 = vector.shape_cast %51 : vector<128xf32> to vector<1x128xf32>
    %53 = vector.broadcast %52 : vector<1x128xf32> to vector<16x128xf32>
    %54 = arith.mulf %49, %53 : vector<16x128xf32>
    %55 = arith.addf %48, %54 : vector<16x128xf32>
    %56 = vector.extract_strided_slice %41 {offsets = [8, 0], sizes = [16, 128], strides = [1, 1]} : vector<32x128xf32> to vector<16x128xf32>
    %c11 = arith.constant 11 : index
    %c0_11 = arith.constant 0 : index
    %57 = vector.load %arg2[%c11, %c0_11] : memref<25x128xf32, #tpu.memory_space<vmem>>, vector<1x128xf32>
    %58 = vector.shape_cast %57 : vector<1x128xf32> to vector<128xf32>
    %59 = vector.shape_cast %58 : vector<128xf32> to vector<1x128xf32>
    %60 = vector.broadcast %59 : vector<1x128xf32> to vector<16x128xf32>
    %61 = arith.mulf %56, %60 : vector<16x128xf32>
    %62 = arith.addf %55, %61 : vector<16x128xf32>
    %63 = vector.extract_strided_slice %41 {offsets = [9, 0], sizes = [16, 128], strides = [1, 1]} : vector<32x128xf32> to vector<16x128xf32>
    %c16 = arith.constant 16 : index
    %c0_12 = arith.constant 0 : index
    %64 = vector.load %arg2[%c16, %c0_12] : memref<25x128xf32, #tpu.memory_space<vmem>>, vector<1x128xf32>
    %65 = vector.shape_cast %64 : vector<1x128xf32> to vector<128xf32>
    %66 = vector.shape_cast %65 : vector<128xf32> to vector<1x128xf32>
    %67 = vector.broadcast %66 : vector<1x128xf32> to vector<16x128xf32>
    %68 = arith.mulf %63, %67 : vector<16x128xf32>
    %69 = arith.addf %62, %68 : vector<16x128xf32>
    %70 = vector.extract_strided_slice %41 {offsets = [10, 0], sizes = [16, 128], strides = [1, 1]} : vector<32x128xf32> to vector<16x128xf32>
    %c21 = arith.constant 21 : index
    %c0_13 = arith.constant 0 : index
    %71 = vector.load %arg2[%c21, %c0_13] : memref<25x128xf32, #tpu.memory_space<vmem>>, vector<1x128xf32>
    %72 = vector.shape_cast %71 : vector<1x128xf32> to vector<128xf32>
    %73 = vector.shape_cast %72 : vector<128xf32> to vector<1x128xf32>
    %74 = vector.broadcast %73 : vector<1x128xf32> to vector<16x128xf32>
    %75 = arith.mulf %70, %74 : vector<16x128xf32>
    %76 = arith.addf %69, %75 : vector<16x128xf32>
    %77 = vector.extract_strided_slice %3 {offsets = [6, 0], sizes = [16, 128], strides = [1, 1]} : vector<32x128xf32> to vector<16x128xf32>
    %c2 = arith.constant 2 : index
    %c0_14 = arith.constant 0 : index
    %78 = vector.load %arg2[%c2, %c0_14] : memref<25x128xf32, #tpu.memory_space<vmem>>, vector<1x128xf32>
    %79 = vector.shape_cast %78 : vector<1x128xf32> to vector<128xf32>
    %80 = vector.shape_cast %79 : vector<128xf32> to vector<1x128xf32>
    %81 = vector.broadcast %80 : vector<1x128xf32> to vector<16x128xf32>
    %82 = arith.mulf %77, %81 : vector<16x128xf32>
    %83 = arith.addf %76, %82 : vector<16x128xf32>
    %84 = vector.extract_strided_slice %3 {offsets = [7, 0], sizes = [16, 128], strides = [1, 1]} : vector<32x128xf32> to vector<16x128xf32>
    %c7 = arith.constant 7 : index
    %c0_15 = arith.constant 0 : index
    %85 = vector.load %arg2[%c7, %c0_15] : memref<25x128xf32, #tpu.memory_space<vmem>>, vector<1x128xf32>
    %86 = vector.shape_cast %85 : vector<1x128xf32> to vector<128xf32>
    %87 = vector.shape_cast %86 : vector<128xf32> to vector<1x128xf32>
    %88 = vector.broadcast %87 : vector<1x128xf32> to vector<16x128xf32>
    %89 = arith.mulf %84, %88 : vector<16x128xf32>
    %90 = arith.addf %83, %89 : vector<16x128xf32>
    %91 = vector.extract_strided_slice %3 {offsets = [8, 0], sizes = [16, 128], strides = [1, 1]} : vector<32x128xf32> to vector<16x128xf32>
    %c12 = arith.constant 12 : index
    %c0_16 = arith.constant 0 : index
    %92 = vector.load %arg2[%c12, %c0_16] : memref<25x128xf32, #tpu.memory_space<vmem>>, vector<1x128xf32>
    %93 = vector.shape_cast %92 : vector<1x128xf32> to vector<128xf32>
    %94 = vector.shape_cast %93 : vector<128xf32> to vector<1x128xf32>
    %95 = vector.broadcast %94 : vector<1x128xf32> to vector<16x128xf32>
    %96 = arith.mulf %91, %95 : vector<16x128xf32>
    %97 = arith.addf %90, %96 : vector<16x128xf32>
    %98 = vector.extract_strided_slice %3 {offsets = [9, 0], sizes = [16, 128], strides = [1, 1]} : vector<32x128xf32> to vector<16x128xf32>
    %c17 = arith.constant 17 : index
    %c0_17 = arith.constant 0 : index
    %99 = vector.load %arg2[%c17, %c0_17] : memref<25x128xf32, #tpu.memory_space<vmem>>, vector<1x128xf32>
    %100 = vector.shape_cast %99 : vector<1x128xf32> to vector<128xf32>
    %101 = vector.shape_cast %100 : vector<128xf32> to vector<1x128xf32>
    %102 = vector.broadcast %101 : vector<1x128xf32> to vector<16x128xf32>
    %103 = arith.mulf %98, %102 : vector<16x128xf32>
    %104 = arith.addf %97, %103 : vector<16x128xf32>
    %105 = vector.extract_strided_slice %3 {offsets = [10, 0], sizes = [16, 128], strides = [1, 1]} : vector<32x128xf32> to vector<16x128xf32>
    %c22 = arith.constant 22 : index
    %c0_18 = arith.constant 0 : index
    %106 = vector.load %arg2[%c22, %c0_18] : memref<25x128xf32, #tpu.memory_space<vmem>>, vector<1x128xf32>
    %107 = vector.shape_cast %106 : vector<1x128xf32> to vector<128xf32>
    %108 = vector.shape_cast %107 : vector<128xf32> to vector<1x128xf32>
    %109 = vector.broadcast %108 : vector<1x128xf32> to vector<16x128xf32>
    %110 = arith.mulf %105, %109 : vector<16x128xf32>
    %111 = arith.addf %104, %110 : vector<16x128xf32>
    %c120_i32 = arith.constant 120 : i32
    %112 = tpu.dynamic_rotate %3 by %c120_i32 dim 1 : vector<32x128xf32>, i32 -> vector<32x128xf32>
    %113 = vector.extract_strided_slice %112 {offsets = [6, 0], sizes = [16, 128], strides = [1, 1]} : vector<32x128xf32> to vector<16x128xf32>
    %c3 = arith.constant 3 : index
    %c0_19 = arith.constant 0 : index
    %114 = vector.load %arg2[%c3, %c0_19] : memref<25x128xf32, #tpu.memory_space<vmem>>, vector<1x128xf32>
    %115 = vector.shape_cast %114 : vector<1x128xf32> to vector<128xf32>
    %116 = vector.shape_cast %115 : vector<128xf32> to vector<1x128xf32>
    %117 = vector.broadcast %116 : vector<1x128xf32> to vector<16x128xf32>
    %118 = arith.mulf %113, %117 : vector<16x128xf32>
    %119 = arith.addf %111, %118 : vector<16x128xf32>
    %120 = vector.extract_strided_slice %112 {offsets = [7, 0], sizes = [16, 128], strides = [1, 1]} : vector<32x128xf32> to vector<16x128xf32>
    %c8 = arith.constant 8 : index
    %c0_20 = arith.constant 0 : index
    %121 = vector.load %arg2[%c8, %c0_20] : memref<25x128xf32, #tpu.memory_space<vmem>>, vector<1x128xf32>
    %122 = vector.shape_cast %121 : vector<1x128xf32> to vector<128xf32>
    %123 = vector.shape_cast %122 : vector<128xf32> to vector<1x128xf32>
    %124 = vector.broadcast %123 : vector<1x128xf32> to vector<16x128xf32>
    %125 = arith.mulf %120, %124 : vector<16x128xf32>
    %126 = arith.addf %119, %125 : vector<16x128xf32>
    %127 = vector.extract_strided_slice %112 {offsets = [8, 0], sizes = [16, 128], strides = [1, 1]} : vector<32x128xf32> to vector<16x128xf32>
    %c13 = arith.constant 13 : index
    %c0_21 = arith.constant 0 : index
    %128 = vector.load %arg2[%c13, %c0_21] : memref<25x128xf32, #tpu.memory_space<vmem>>, vector<1x128xf32>
    %129 = vector.shape_cast %128 : vector<1x128xf32> to vector<128xf32>
    %130 = vector.shape_cast %129 : vector<128xf32> to vector<1x128xf32>
    %131 = vector.broadcast %130 : vector<1x128xf32> to vector<16x128xf32>
    %132 = arith.mulf %127, %131 : vector<16x128xf32>
    %133 = arith.addf %126, %132 : vector<16x128xf32>
    %134 = vector.extract_strided_slice %112 {offsets = [9, 0], sizes = [16, 128], strides = [1, 1]} : vector<32x128xf32> to vector<16x128xf32>
    %c18 = arith.constant 18 : index
    %c0_22 = arith.constant 0 : index
    %135 = vector.load %arg2[%c18, %c0_22] : memref<25x128xf32, #tpu.memory_space<vmem>>, vector<1x128xf32>
    %136 = vector.shape_cast %135 : vector<1x128xf32> to vector<128xf32>
    %137 = vector.shape_cast %136 : vector<128xf32> to vector<1x128xf32>
    %138 = vector.broadcast %137 : vector<1x128xf32> to vector<16x128xf32>
    %139 = arith.mulf %134, %138 : vector<16x128xf32>
    %140 = arith.addf %133, %139 : vector<16x128xf32>
    %141 = vector.extract_strided_slice %112 {offsets = [10, 0], sizes = [16, 128], strides = [1, 1]} : vector<32x128xf32> to vector<16x128xf32>
    %c23 = arith.constant 23 : index
    %c0_23 = arith.constant 0 : index
    %142 = vector.load %arg2[%c23, %c0_23] : memref<25x128xf32, #tpu.memory_space<vmem>>, vector<1x128xf32>
    %143 = vector.shape_cast %142 : vector<1x128xf32> to vector<128xf32>
    %144 = vector.shape_cast %143 : vector<128xf32> to vector<1x128xf32>
    %145 = vector.broadcast %144 : vector<1x128xf32> to vector<16x128xf32>
    %146 = arith.mulf %141, %145 : vector<16x128xf32>
    %147 = arith.addf %140, %146 : vector<16x128xf32>
    %c112_i32 = arith.constant 112 : i32
    %148 = tpu.dynamic_rotate %3 by %c112_i32 dim 1 : vector<32x128xf32>, i32 -> vector<32x128xf32>
    %149 = vector.extract_strided_slice %148 {offsets = [6, 0], sizes = [16, 128], strides = [1, 1]} : vector<32x128xf32> to vector<16x128xf32>
    %c4 = arith.constant 4 : index
    %c0_24 = arith.constant 0 : index
    %150 = vector.load %arg2[%c4, %c0_24] : memref<25x128xf32, #tpu.memory_space<vmem>>, vector<1x128xf32>
    %151 = vector.shape_cast %150 : vector<1x128xf32> to vector<128xf32>
    %152 = vector.shape_cast %151 : vector<128xf32> to vector<1x128xf32>
    %153 = vector.broadcast %152 : vector<1x128xf32> to vector<16x128xf32>
    %154 = arith.mulf %149, %153 : vector<16x128xf32>
    %155 = arith.addf %147, %154 : vector<16x128xf32>
    %156 = vector.extract_strided_slice %148 {offsets = [7, 0], sizes = [16, 128], strides = [1, 1]} : vector<32x128xf32> to vector<16x128xf32>
    %c9 = arith.constant 9 : index
    %c0_25 = arith.constant 0 : index
    %157 = vector.load %arg2[%c9, %c0_25] : memref<25x128xf32, #tpu.memory_space<vmem>>, vector<1x128xf32>
    %158 = vector.shape_cast %157 : vector<1x128xf32> to vector<128xf32>
    %159 = vector.shape_cast %158 : vector<128xf32> to vector<1x128xf32>
    %160 = vector.broadcast %159 : vector<1x128xf32> to vector<16x128xf32>
    %161 = arith.mulf %156, %160 : vector<16x128xf32>
    %162 = arith.addf %155, %161 : vector<16x128xf32>
    %163 = vector.extract_strided_slice %148 {offsets = [8, 0], sizes = [16, 128], strides = [1, 1]} : vector<32x128xf32> to vector<16x128xf32>
    %c14 = arith.constant 14 : index
    %c0_26 = arith.constant 0 : index
    %164 = vector.load %arg2[%c14, %c0_26] : memref<25x128xf32, #tpu.memory_space<vmem>>, vector<1x128xf32>
    %165 = vector.shape_cast %164 : vector<1x128xf32> to vector<128xf32>
    %166 = vector.shape_cast %165 : vector<128xf32> to vector<1x128xf32>
    %167 = vector.broadcast %166 : vector<1x128xf32> to vector<16x128xf32>
    %168 = arith.mulf %163, %167 : vector<16x128xf32>
    %169 = arith.addf %162, %168 : vector<16x128xf32>
    %170 = vector.extract_strided_slice %148 {offsets = [9, 0], sizes = [16, 128], strides = [1, 1]} : vector<32x128xf32> to vector<16x128xf32>
    %c19 = arith.constant 19 : index
    %c0_27 = arith.constant 0 : index
    %171 = vector.load %arg2[%c19, %c0_27] : memref<25x128xf32, #tpu.memory_space<vmem>>, vector<1x128xf32>
    %172 = vector.shape_cast %171 : vector<1x128xf32> to vector<128xf32>
    %173 = vector.shape_cast %172 : vector<128xf32> to vector<1x128xf32>
    %174 = vector.broadcast %173 : vector<1x128xf32> to vector<16x128xf32>
    %175 = arith.mulf %170, %174 : vector<16x128xf32>
    %176 = arith.addf %169, %175 : vector<16x128xf32>
    %177 = vector.extract_strided_slice %148 {offsets = [10, 0], sizes = [16, 128], strides = [1, 1]} : vector<32x128xf32> to vector<16x128xf32>
    %c24 = arith.constant 24 : index
    %c0_28 = arith.constant 0 : index
    %178 = vector.load %arg2[%c24, %c0_28] : memref<25x128xf32, #tpu.memory_space<vmem>>, vector<1x128xf32>
    %179 = vector.shape_cast %178 : vector<1x128xf32> to vector<128xf32>
    %180 = vector.shape_cast %179 : vector<128xf32> to vector<1x128xf32>
    %181 = vector.broadcast %180 : vector<1x128xf32> to vector<16x128xf32>
    %182 = arith.mulf %177, %181 : vector<16x128xf32>
    %183 = arith.addf %176, %182 : vector<16x128xf32>
    %c0_29 = arith.constant 0 : index
    %c0_30 = arith.constant 0 : index
    %184 = vector.load %arg3[%c0_29, %c0_30] : memref<1x128xf32, #tpu.memory_space<vmem>>, vector<1x128xf32>
    %185 = vector.broadcast %184 : vector<1x128xf32> to vector<16x128xf32>
    %186 = arith.addf %183, %185 : vector<16x128xf32>
    %cst_31 = arith.constant 0.000000e+00 : f32
    %187 = vector.broadcast %cst_31 : f32 to vector<16x128xf32>
    %188 = tpu.concatenate %187, %186, %187 in 0 : vector<16x128xf32>, vector<16x128xf32>, vector<16x128xf32> -> vector<48x128xf32>
    %cst_32 = arith.constant 0.000000e+00 : f32
    %189 = vector.broadcast %cst_32 : f32 to vector<16x128xf32>
    %c72_i32 = arith.constant 72 : i32
    %190 = tpu.dynamic_rotate %188 by %c72_i32 dim 1 : vector<48x128xf32>, i32 -> vector<48x128xf32>
    %191 = vector.extract_strided_slice %190 {offsets = [7, 0], sizes = [16, 128], strides = [1, 1]} : vector<48x128xf32> to vector<16x128xf32>
    %c0_33 = arith.constant 0 : index
    %c0_34 = arith.constant 0 : index
    %192 = vector.load %arg4[%c0_33, %c0_34] : memref<49x128xf32, #tpu.memory_space<vmem>>, vector<1x128xf32>
    %193 = vector.shape_cast %192 : vector<1x128xf32> to vector<128xf32>
    %194 = vector.shape_cast %193 : vector<128xf32> to vector<1x128xf32>
    %195 = vector.broadcast %194 : vector<1x128xf32> to vector<16x128xf32>
    %196 = arith.mulf %191, %195 : vector<16x128xf32>
    %197 = arith.addf %189, %196 : vector<16x128xf32>
    %198 = vector.extract_strided_slice %190 {offsets = [10, 0], sizes = [16, 128], strides = [1, 1]} : vector<48x128xf32> to vector<16x128xf32>
    %c7_35 = arith.constant 7 : index
    %c0_36 = arith.constant 0 : index
    %199 = vector.load %arg4[%c7_35, %c0_36] : memref<49x128xf32, #tpu.memory_space<vmem>>, vector<1x128xf32>
    %200 = vector.shape_cast %199 : vector<1x128xf32> to vector<128xf32>
    %201 = vector.shape_cast %200 : vector<128xf32> to vector<1x128xf32>
    %202 = vector.broadcast %201 : vector<1x128xf32> to vector<16x128xf32>
    %203 = arith.mulf %198, %202 : vector<16x128xf32>
    %204 = arith.addf %197, %203 : vector<16x128xf32>
    %205 = vector.extract_strided_slice %190 {offsets = [13, 0], sizes = [16, 128], strides = [1, 1]} : vector<48x128xf32> to vector<16x128xf32>
    %c14_37 = arith.constant 14 : index
    %c0_38 = arith.constant 0 : index
    %206 = vector.load %arg4[%c14_37, %c0_38] : memref<49x128xf32, #tpu.memory_space<vmem>>, vector<1x128xf32>
    %207 = vector.shape_cast %206 : vector<1x128xf32> to vector<128xf32>
    %208 = vector.shape_cast %207 : vector<128xf32> to vector<1x128xf32>
    %209 = vector.broadcast %208 : vector<1x128xf32> to vector<16x128xf32>
    %210 = arith.mulf %205, %209 : vector<16x128xf32>
    %211 = arith.addf %204, %210 : vector<16x128xf32>
    %212 = vector.extract_strided_slice %190 {offsets = [16, 0], sizes = [16, 128], strides = [1, 1]} : vector<48x128xf32> to vector<16x128xf32>
    %c21_39 = arith.constant 21 : index
    %c0_40 = arith.constant 0 : index
    %213 = vector.load %arg4[%c21_39, %c0_40] : memref<49x128xf32, #tpu.memory_space<vmem>>, vector<1x128xf32>
    %214 = vector.shape_cast %213 : vector<1x128xf32> to vector<128xf32>
    %215 = vector.shape_cast %214 : vector<128xf32> to vector<1x128xf32>
    %216 = vector.broadcast %215 : vector<1x128xf32> to vector<16x128xf32>
    %217 = arith.mulf %212, %216 : vector<16x128xf32>
    %218 = arith.addf %211, %217 : vector<16x128xf32>
    %219 = vector.extract_strided_slice %190 {offsets = [19, 0], sizes = [16, 128], strides = [1, 1]} : vector<48x128xf32> to vector<16x128xf32>
    %c28 = arith.constant 28 : index
    %c0_41 = arith.constant 0 : index
    %220 = vector.load %arg4[%c28, %c0_41] : memref<49x128xf32, #tpu.memory_space<vmem>>, vector<1x128xf32>
    %221 = vector.shape_cast %220 : vector<1x128xf32> to vector<128xf32>
    %222 = vector.shape_cast %221 : vector<128xf32> to vector<1x128xf32>
    %223 = vector.broadcast %222 : vector<1x128xf32> to vector<16x128xf32>
    %224 = arith.mulf %219, %223 : vector<16x128xf32>
    %225 = arith.addf %218, %224 : vector<16x128xf32>
    %226 = vector.extract_strided_slice %190 {offsets = [22, 0], sizes = [16, 128], strides = [1, 1]} : vector<48x128xf32> to vector<16x128xf32>
    %c35 = arith.constant 35 : index
    %c0_42 = arith.constant 0 : index
    %227 = vector.load %arg4[%c35, %c0_42] : memref<49x128xf32, #tpu.memory_space<vmem>>, vector<1x128xf32>
    %228 = vector.shape_cast %227 : vector<1x128xf32> to vector<128xf32>
    %229 = vector.shape_cast %228 : vector<128xf32> to vector<1x128xf32>
    %230 = vector.broadcast %229 : vector<1x128xf32> to vector<16x128xf32>
    %231 = arith.mulf %226, %230 : vector<16x128xf32>
    %232 = arith.addf %225, %231 : vector<16x128xf32>
    %233 = vector.extract_strided_slice %190 {offsets = [25, 0], sizes = [16, 128], strides = [1, 1]} : vector<48x128xf32> to vector<16x128xf32>
    %c42 = arith.constant 42 : index
    %c0_43 = arith.constant 0 : index
    %234 = vector.load %arg4[%c42, %c0_43] : memref<49x128xf32, #tpu.memory_space<vmem>>, vector<1x128xf32>
    %235 = vector.shape_cast %234 : vector<1x128xf32> to vector<128xf32>
    %236 = vector.shape_cast %235 : vector<128xf32> to vector<1x128xf32>
    %237 = vector.broadcast %236 : vector<1x128xf32> to vector<16x128xf32>
    %238 = arith.mulf %233, %237 : vector<16x128xf32>
    %239 = arith.addf %232, %238 : vector<16x128xf32>
    %c48_i32 = arith.constant 48 : i32
    %240 = tpu.dynamic_rotate %188 by %c48_i32 dim 1 : vector<48x128xf32>, i32 -> vector<48x128xf32>
    %241 = vector.extract_strided_slice %240 {offsets = [7, 0], sizes = [16, 128], strides = [1, 1]} : vector<48x128xf32> to vector<16x128xf32>
    %c1_44 = arith.constant 1 : index
    %c0_45 = arith.constant 0 : index
    %242 = vector.load %arg4[%c1_44, %c0_45] : memref<49x128xf32, #tpu.memory_space<vmem>>, vector<1x128xf32>
    %243 = vector.shape_cast %242 : vector<1x128xf32> to vector<128xf32>
    %244 = vector.shape_cast %243 : vector<128xf32> to vector<1x128xf32>
    %245 = vector.broadcast %244 : vector<1x128xf32> to vector<16x128xf32>
    %246 = arith.mulf %241, %245 : vector<16x128xf32>
    %247 = arith.addf %239, %246 : vector<16x128xf32>
    %248 = vector.extract_strided_slice %240 {offsets = [10, 0], sizes = [16, 128], strides = [1, 1]} : vector<48x128xf32> to vector<16x128xf32>
    %c8_46 = arith.constant 8 : index
    %c0_47 = arith.constant 0 : index
    %249 = vector.load %arg4[%c8_46, %c0_47] : memref<49x128xf32, #tpu.memory_space<vmem>>, vector<1x128xf32>
    %250 = vector.shape_cast %249 : vector<1x128xf32> to vector<128xf32>
    %251 = vector.shape_cast %250 : vector<128xf32> to vector<1x128xf32>
    %252 = vector.broadcast %251 : vector<1x128xf32> to vector<16x128xf32>
    %253 = arith.mulf %248, %252 : vector<16x128xf32>
    %254 = arith.addf %247, %253 : vector<16x128xf32>
    %255 = vector.extract_strided_slice %240 {offsets = [13, 0], sizes = [16, 128], strides = [1, 1]} : vector<48x128xf32> to vector<16x128xf32>
    %c15_48 = arith.constant 15 : index
    %c0_49 = arith.constant 0 : index
    %256 = vector.load %arg4[%c15_48, %c0_49] : memref<49x128xf32, #tpu.memory_space<vmem>>, vector<1x128xf32>
    %257 = vector.shape_cast %256 : vector<1x128xf32> to vector<128xf32>
    %258 = vector.shape_cast %257 : vector<128xf32> to vector<1x128xf32>
    %259 = vector.broadcast %258 : vector<1x128xf32> to vector<16x128xf32>
    %260 = arith.mulf %255, %259 : vector<16x128xf32>
    %261 = arith.addf %254, %260 : vector<16x128xf32>
    %262 = vector.extract_strided_slice %240 {offsets = [16, 0], sizes = [16, 128], strides = [1, 1]} : vector<48x128xf32> to vector<16x128xf32>
    %c22_50 = arith.constant 22 : index
    %c0_51 = arith.constant 0 : index
    %263 = vector.load %arg4[%c22_50, %c0_51] : memref<49x128xf32, #tpu.memory_space<vmem>>, vector<1x128xf32>
    %264 = vector.shape_cast %263 : vector<1x128xf32> to vector<128xf32>
    %265 = vector.shape_cast %264 : vector<128xf32> to vector<1x128xf32>
    %266 = vector.broadcast %265 : vector<1x128xf32> to vector<16x128xf32>
    %267 = arith.mulf %262, %266 : vector<16x128xf32>
    %268 = arith.addf %261, %267 : vector<16x128xf32>
    %269 = vector.extract_strided_slice %240 {offsets = [19, 0], sizes = [16, 128], strides = [1, 1]} : vector<48x128xf32> to vector<16x128xf32>
    %c29 = arith.constant 29 : index
    %c0_52 = arith.constant 0 : index
    %270 = vector.load %arg4[%c29, %c0_52] : memref<49x128xf32, #tpu.memory_space<vmem>>, vector<1x128xf32>
    %271 = vector.shape_cast %270 : vector<1x128xf32> to vector<128xf32>
    %272 = vector.shape_cast %271 : vector<128xf32> to vector<1x128xf32>
    %273 = vector.broadcast %272 : vector<1x128xf32> to vector<16x128xf32>
    %274 = arith.mulf %269, %273 : vector<16x128xf32>
    %275 = arith.addf %268, %274 : vector<16x128xf32>
    %276 = vector.extract_strided_slice %240 {offsets = [22, 0], sizes = [16, 128], strides = [1, 1]} : vector<48x128xf32> to vector<16x128xf32>
    %c36 = arith.constant 36 : index
    %c0_53 = arith.constant 0 : index
    %277 = vector.load %arg4[%c36, %c0_53] : memref<49x128xf32, #tpu.memory_space<vmem>>, vector<1x128xf32>
    %278 = vector.shape_cast %277 : vector<1x128xf32> to vector<128xf32>
    %279 = vector.shape_cast %278 : vector<128xf32> to vector<1x128xf32>
    %280 = vector.broadcast %279 : vector<1x128xf32> to vector<16x128xf32>
    %281 = arith.mulf %276, %280 : vector<16x128xf32>
    %282 = arith.addf %275, %281 : vector<16x128xf32>
    %283 = vector.extract_strided_slice %240 {offsets = [25, 0], sizes = [16, 128], strides = [1, 1]} : vector<48x128xf32> to vector<16x128xf32>
    %c43 = arith.constant 43 : index
    %c0_54 = arith.constant 0 : index
    %284 = vector.load %arg4[%c43, %c0_54] : memref<49x128xf32, #tpu.memory_space<vmem>>, vector<1x128xf32>
    %285 = vector.shape_cast %284 : vector<1x128xf32> to vector<128xf32>
    %286 = vector.shape_cast %285 : vector<128xf32> to vector<1x128xf32>
    %287 = vector.broadcast %286 : vector<1x128xf32> to vector<16x128xf32>
    %288 = arith.mulf %283, %287 : vector<16x128xf32>
    %289 = arith.addf %282, %288 : vector<16x128xf32>
    %c24_i32 = arith.constant 24 : i32
    %290 = tpu.dynamic_rotate %188 by %c24_i32 dim 1 : vector<48x128xf32>, i32 -> vector<48x128xf32>
    %291 = vector.extract_strided_slice %290 {offsets = [7, 0], sizes = [16, 128], strides = [1, 1]} : vector<48x128xf32> to vector<16x128xf32>
    %c2_55 = arith.constant 2 : index
    %c0_56 = arith.constant 0 : index
    %292 = vector.load %arg4[%c2_55, %c0_56] : memref<49x128xf32, #tpu.memory_space<vmem>>, vector<1x128xf32>
    %293 = vector.shape_cast %292 : vector<1x128xf32> to vector<128xf32>
    %294 = vector.shape_cast %293 : vector<128xf32> to vector<1x128xf32>
    %295 = vector.broadcast %294 : vector<1x128xf32> to vector<16x128xf32>
    %296 = arith.mulf %291, %295 : vector<16x128xf32>
    %297 = arith.addf %289, %296 : vector<16x128xf32>
    %298 = vector.extract_strided_slice %290 {offsets = [10, 0], sizes = [16, 128], strides = [1, 1]} : vector<48x128xf32> to vector<16x128xf32>
    %c9_57 = arith.constant 9 : index
    %c0_58 = arith.constant 0 : index
    %299 = vector.load %arg4[%c9_57, %c0_58] : memref<49x128xf32, #tpu.memory_space<vmem>>, vector<1x128xf32>
    %300 = vector.shape_cast %299 : vector<1x128xf32> to vector<128xf32>
    %301 = vector.shape_cast %300 : vector<128xf32> to vector<1x128xf32>
    %302 = vector.broadcast %301 : vector<1x128xf32> to vector<16x128xf32>
    %303 = arith.mulf %298, %302 : vector<16x128xf32>
    %304 = arith.addf %297, %303 : vector<16x128xf32>
    %305 = vector.extract_strided_slice %290 {offsets = [13, 0], sizes = [16, 128], strides = [1, 1]} : vector<48x128xf32> to vector<16x128xf32>
    %c16_59 = arith.constant 16 : index
    %c0_60 = arith.constant 0 : index
    %306 = vector.load %arg4[%c16_59, %c0_60] : memref<49x128xf32, #tpu.memory_space<vmem>>, vector<1x128xf32>
    %307 = vector.shape_cast %306 : vector<1x128xf32> to vector<128xf32>
    %308 = vector.shape_cast %307 : vector<128xf32> to vector<1x128xf32>
    %309 = vector.broadcast %308 : vector<1x128xf32> to vector<16x128xf32>
    %310 = arith.mulf %305, %309 : vector<16x128xf32>
    %311 = arith.addf %304, %310 : vector<16x128xf32>
    %312 = vector.extract_strided_slice %290 {offsets = [16, 0], sizes = [16, 128], strides = [1, 1]} : vector<48x128xf32> to vector<16x128xf32>
    %c23_61 = arith.constant 23 : index
    %c0_62 = arith.constant 0 : index
    %313 = vector.load %arg4[%c23_61, %c0_62] : memref<49x128xf32, #tpu.memory_space<vmem>>, vector<1x128xf32>
    %314 = vector.shape_cast %313 : vector<1x128xf32> to vector<128xf32>
    %315 = vector.shape_cast %314 : vector<128xf32> to vector<1x128xf32>
    %316 = vector.broadcast %315 : vector<1x128xf32> to vector<16x128xf32>
    %317 = arith.mulf %312, %316 : vector<16x128xf32>
    %318 = arith.addf %311, %317 : vector<16x128xf32>
    %319 = vector.extract_strided_slice %290 {offsets = [19, 0], sizes = [16, 128], strides = [1, 1]} : vector<48x128xf32> to vector<16x128xf32>
    %c30 = arith.constant 30 : index
    %c0_63 = arith.constant 0 : index
    %320 = vector.load %arg4[%c30, %c0_63] : memref<49x128xf32, #tpu.memory_space<vmem>>, vector<1x128xf32>
    %321 = vector.shape_cast %320 : vector<1x128xf32> to vector<128xf32>
    %322 = vector.shape_cast %321 : vector<128xf32> to vector<1x128xf32>
    %323 = vector.broadcast %322 : vector<1x128xf32> to vector<16x128xf32>
    %324 = arith.mulf %319, %323 : vector<16x128xf32>
    %325 = arith.addf %318, %324 : vector<16x128xf32>
    %326 = vector.extract_strided_slice %290 {offsets = [22, 0], sizes = [16, 128], strides = [1, 1]} : vector<48x128xf32> to vector<16x128xf32>
    %c37 = arith.constant 37 : index
    %c0_64 = arith.constant 0 : index
    %327 = vector.load %arg4[%c37, %c0_64] : memref<49x128xf32, #tpu.memory_space<vmem>>, vector<1x128xf32>
    %328 = vector.shape_cast %327 : vector<1x128xf32> to vector<128xf32>
    %329 = vector.shape_cast %328 : vector<128xf32> to vector<1x128xf32>
    %330 = vector.broadcast %329 : vector<1x128xf32> to vector<16x128xf32>
    %331 = arith.mulf %326, %330 : vector<16x128xf32>
    %332 = arith.addf %325, %331 : vector<16x128xf32>
    %333 = vector.extract_strided_slice %290 {offsets = [25, 0], sizes = [16, 128], strides = [1, 1]} : vector<48x128xf32> to vector<16x128xf32>
    %c44 = arith.constant 44 : index
    %c0_65 = arith.constant 0 : index
    %334 = vector.load %arg4[%c44, %c0_65] : memref<49x128xf32, #tpu.memory_space<vmem>>, vector<1x128xf32>
    %335 = vector.shape_cast %334 : vector<1x128xf32> to vector<128xf32>
    %336 = vector.shape_cast %335 : vector<128xf32> to vector<1x128xf32>
    %337 = vector.broadcast %336 : vector<1x128xf32> to vector<16x128xf32>
    %338 = arith.mulf %333, %337 : vector<16x128xf32>
    %339 = arith.addf %332, %338 : vector<16x128xf32>
    %340 = vector.extract_strided_slice %188 {offsets = [7, 0], sizes = [16, 128], strides = [1, 1]} : vector<48x128xf32> to vector<16x128xf32>
    %c3_66 = arith.constant 3 : index
    %c0_67 = arith.constant 0 : index
    %341 = vector.load %arg4[%c3_66, %c0_67] : memref<49x128xf32, #tpu.memory_space<vmem>>, vector<1x128xf32>
    %342 = vector.shape_cast %341 : vector<1x128xf32> to vector<128xf32>
    %343 = vector.shape_cast %342 : vector<128xf32> to vector<1x128xf32>
    %344 = vector.broadcast %343 : vector<1x128xf32> to vector<16x128xf32>
    %345 = arith.mulf %340, %344 : vector<16x128xf32>
    %346 = arith.addf %339, %345 : vector<16x128xf32>
    %347 = vector.extract_strided_slice %188 {offsets = [10, 0], sizes = [16, 128], strides = [1, 1]} : vector<48x128xf32> to vector<16x128xf32>
    %c10_68 = arith.constant 10 : index
    %c0_69 = arith.constant 0 : index
    %348 = vector.load %arg4[%c10_68, %c0_69] : memref<49x128xf32, #tpu.memory_space<vmem>>, vector<1x128xf32>
    %349 = vector.shape_cast %348 : vector<1x128xf32> to vector<128xf32>
    %350 = vector.shape_cast %349 : vector<128xf32> to vector<1x128xf32>
    %351 = vector.broadcast %350 : vector<1x128xf32> to vector<16x128xf32>
    %352 = arith.mulf %347, %351 : vector<16x128xf32>
    %353 = arith.addf %346, %352 : vector<16x128xf32>
    %354 = vector.extract_strided_slice %188 {offsets = [13, 0], sizes = [16, 128], strides = [1, 1]} : vector<48x128xf32> to vector<16x128xf32>
    %c17_70 = arith.constant 17 : index
    %c0_71 = arith.constant 0 : index
    %355 = vector.load %arg4[%c17_70, %c0_71] : memref<49x128xf32, #tpu.memory_space<vmem>>, vector<1x128xf32>
    %356 = vector.shape_cast %355 : vector<1x128xf32> to vector<128xf32>
    %357 = vector.shape_cast %356 : vector<128xf32> to vector<1x128xf32>
    %358 = vector.broadcast %357 : vector<1x128xf32> to vector<16x128xf32>
    %359 = arith.mulf %354, %358 : vector<16x128xf32>
    %360 = arith.addf %353, %359 : vector<16x128xf32>
    %361 = vector.extract_strided_slice %188 {offsets = [16, 0], sizes = [16, 128], strides = [1, 1]} : vector<48x128xf32> to vector<16x128xf32>
    %c24_72 = arith.constant 24 : index
    %c0_73 = arith.constant 0 : index
    %362 = vector.load %arg4[%c24_72, %c0_73] : memref<49x128xf32, #tpu.memory_space<vmem>>, vector<1x128xf32>
    %363 = vector.shape_cast %362 : vector<1x128xf32> to vector<128xf32>
    %364 = vector.shape_cast %363 : vector<128xf32> to vector<1x128xf32>
    %365 = vector.broadcast %364 : vector<1x128xf32> to vector<16x128xf32>
    %366 = arith.mulf %361, %365 : vector<16x128xf32>
    %367 = arith.addf %360, %366 : vector<16x128xf32>
    %368 = vector.extract_strided_slice %188 {offsets = [19, 0], sizes = [16, 128], strides = [1, 1]} : vector<48x128xf32> to vector<16x128xf32>
    %c31 = arith.constant 31 : index
    %c0_74 = arith.constant 0 : index
    %369 = vector.load %arg4[%c31, %c0_74] : memref<49x128xf32, #tpu.memory_space<vmem>>, vector<1x128xf32>
    %370 = vector.shape_cast %369 : vector<1x128xf32> to vector<128xf32>
    %371 = vector.shape_cast %370 : vector<128xf32> to vector<1x128xf32>
    %372 = vector.broadcast %371 : vector<1x128xf32> to vector<16x128xf32>
    %373 = arith.mulf %368, %372 : vector<16x128xf32>
    %374 = arith.addf %367, %373 : vector<16x128xf32>
    %375 = vector.extract_strided_slice %188 {offsets = [22, 0], sizes = [16, 128], strides = [1, 1]} : vector<48x128xf32> to vector<16x128xf32>
    %c38 = arith.constant 38 : index
    %c0_75 = arith.constant 0 : index
    %376 = vector.load %arg4[%c38, %c0_75] : memref<49x128xf32, #tpu.memory_space<vmem>>, vector<1x128xf32>
    %377 = vector.shape_cast %376 : vector<1x128xf32> to vector<128xf32>
    %378 = vector.shape_cast %377 : vector<128xf32> to vector<1x128xf32>
    %379 = vector.broadcast %378 : vector<1x128xf32> to vector<16x128xf32>
    %380 = arith.mulf %375, %379 : vector<16x128xf32>
    %381 = arith.addf %374, %380 : vector<16x128xf32>
    %382 = vector.extract_strided_slice %188 {offsets = [25, 0], sizes = [16, 128], strides = [1, 1]} : vector<48x128xf32> to vector<16x128xf32>
    %c45 = arith.constant 45 : index
    %c0_76 = arith.constant 0 : index
    %383 = vector.load %arg4[%c45, %c0_76] : memref<49x128xf32, #tpu.memory_space<vmem>>, vector<1x128xf32>
    %384 = vector.shape_cast %383 : vector<1x128xf32> to vector<128xf32>
    %385 = vector.shape_cast %384 : vector<128xf32> to vector<1x128xf32>
    %386 = vector.broadcast %385 : vector<1x128xf32> to vector<16x128xf32>
    %387 = arith.mulf %382, %386 : vector<16x128xf32>
    %388 = arith.addf %381, %387 : vector<16x128xf32>
    %c104_i32 = arith.constant 104 : i32
    %389 = tpu.dynamic_rotate %188 by %c104_i32 dim 1 : vector<48x128xf32>, i32 -> vector<48x128xf32>
    %390 = vector.extract_strided_slice %389 {offsets = [7, 0], sizes = [16, 128], strides = [1, 1]} : vector<48x128xf32> to vector<16x128xf32>
    %c4_77 = arith.constant 4 : index
    %c0_78 = arith.constant 0 : index
    %391 = vector.load %arg4[%c4_77, %c0_78] : memref<49x128xf32, #tpu.memory_space<vmem>>, vector<1x128xf32>
    %392 = vector.shape_cast %391 : vector<1x128xf32> to vector<128xf32>
    %393 = vector.shape_cast %392 : vector<128xf32> to vector<1x128xf32>
    %394 = vector.broadcast %393 : vector<1x128xf32> to vector<16x128xf32>
    %395 = arith.mulf %390, %394 : vector<16x128xf32>
    %396 = arith.addf %388, %395 : vector<16x128xf32>
    %397 = vector.extract_strided_slice %389 {offsets = [10, 0], sizes = [16, 128], strides = [1, 1]} : vector<48x128xf32> to vector<16x128xf32>
    %c11_79 = arith.constant 11 : index
    %c0_80 = arith.constant 0 : index
    %398 = vector.load %arg4[%c11_79, %c0_80] : memref<49x128xf32, #tpu.memory_space<vmem>>, vector<1x128xf32>
    %399 = vector.shape_cast %398 : vector<1x128xf32> to vector<128xf32>
    %400 = vector.shape_cast %399 : vector<128xf32> to vector<1x128xf32>
    %401 = vector.broadcast %400 : vector<1x128xf32> to vector<16x128xf32>
    %402 = arith.mulf %397, %401 : vector<16x128xf32>
    %403 = arith.addf %396, %402 : vector<16x128xf32>
    %404 = vector.extract_strided_slice %389 {offsets = [13, 0], sizes = [16, 128], strides = [1, 1]} : vector<48x128xf32> to vector<16x128xf32>
    %c18_81 = arith.constant 18 : index
    %c0_82 = arith.constant 0 : index
    %405 = vector.load %arg4[%c18_81, %c0_82] : memref<49x128xf32, #tpu.memory_space<vmem>>, vector<1x128xf32>
    %406 = vector.shape_cast %405 : vector<1x128xf32> to vector<128xf32>
    %407 = vector.shape_cast %406 : vector<128xf32> to vector<1x128xf32>
    %408 = vector.broadcast %407 : vector<1x128xf32> to vector<16x128xf32>
    %409 = arith.mulf %404, %408 : vector<16x128xf32>
    %410 = arith.addf %403, %409 : vector<16x128xf32>
    %411 = vector.extract_strided_slice %389 {offsets = [16, 0], sizes = [16, 128], strides = [1, 1]} : vector<48x128xf32> to vector<16x128xf32>
    %c25 = arith.constant 25 : index
    %c0_83 = arith.constant 0 : index
    %412 = vector.load %arg4[%c25, %c0_83] : memref<49x128xf32, #tpu.memory_space<vmem>>, vector<1x128xf32>
    %413 = vector.shape_cast %412 : vector<1x128xf32> to vector<128xf32>
    %414 = vector.shape_cast %413 : vector<128xf32> to vector<1x128xf32>
    %415 = vector.broadcast %414 : vector<1x128xf32> to vector<16x128xf32>
    %416 = arith.mulf %411, %415 : vector<16x128xf32>
    %417 = arith.addf %410, %416 : vector<16x128xf32>
    %418 = vector.extract_strided_slice %389 {offsets = [19, 0], sizes = [16, 128], strides = [1, 1]} : vector<48x128xf32> to vector<16x128xf32>
    %c32 = arith.constant 32 : index
    %c0_84 = arith.constant 0 : index
    %419 = vector.load %arg4[%c32, %c0_84] : memref<49x128xf32, #tpu.memory_space<vmem>>, vector<1x128xf32>
    %420 = vector.shape_cast %419 : vector<1x128xf32> to vector<128xf32>
    %421 = vector.shape_cast %420 : vector<128xf32> to vector<1x128xf32>
    %422 = vector.broadcast %421 : vector<1x128xf32> to vector<16x128xf32>
    %423 = arith.mulf %418, %422 : vector<16x128xf32>
    %424 = arith.addf %417, %423 : vector<16x128xf32>
    %425 = vector.extract_strided_slice %389 {offsets = [22, 0], sizes = [16, 128], strides = [1, 1]} : vector<48x128xf32> to vector<16x128xf32>
    %c39 = arith.constant 39 : index
    %c0_85 = arith.constant 0 : index
    %426 = vector.load %arg4[%c39, %c0_85] : memref<49x128xf32, #tpu.memory_space<vmem>>, vector<1x128xf32>
    %427 = vector.shape_cast %426 : vector<1x128xf32> to vector<128xf32>
    %428 = vector.shape_cast %427 : vector<128xf32> to vector<1x128xf32>
    %429 = vector.broadcast %428 : vector<1x128xf32> to vector<16x128xf32>
    %430 = arith.mulf %425, %429 : vector<16x128xf32>
    %431 = arith.addf %424, %430 : vector<16x128xf32>
    %432 = vector.extract_strided_slice %389 {offsets = [25, 0], sizes = [16, 128], strides = [1, 1]} : vector<48x128xf32> to vector<16x128xf32>
    %c46 = arith.constant 46 : index
    %c0_86 = arith.constant 0 : index
    %433 = vector.load %arg4[%c46, %c0_86] : memref<49x128xf32, #tpu.memory_space<vmem>>, vector<1x128xf32>
    %434 = vector.shape_cast %433 : vector<1x128xf32> to vector<128xf32>
    %435 = vector.shape_cast %434 : vector<128xf32> to vector<1x128xf32>
    %436 = vector.broadcast %435 : vector<1x128xf32> to vector<16x128xf32>
    %437 = arith.mulf %432, %436 : vector<16x128xf32>
    %438 = arith.addf %431, %437 : vector<16x128xf32>
    %c80_i32 = arith.constant 80 : i32
    %439 = tpu.dynamic_rotate %188 by %c80_i32 dim 1 : vector<48x128xf32>, i32 -> vector<48x128xf32>
    %440 = vector.extract_strided_slice %439 {offsets = [7, 0], sizes = [16, 128], strides = [1, 1]} : vector<48x128xf32> to vector<16x128xf32>
    %c5_87 = arith.constant 5 : index
    %c0_88 = arith.constant 0 : index
    %441 = vector.load %arg4[%c5_87, %c0_88] : memref<49x128xf32, #tpu.memory_space<vmem>>, vector<1x128xf32>
    %442 = vector.shape_cast %441 : vector<1x128xf32> to vector<128xf32>
    %443 = vector.shape_cast %442 : vector<128xf32> to vector<1x128xf32>
    %444 = vector.broadcast %443 : vector<1x128xf32> to vector<16x128xf32>
    %445 = arith.mulf %440, %444 : vector<16x128xf32>
    %446 = arith.addf %438, %445 : vector<16x128xf32>
    %447 = vector.extract_strided_slice %439 {offsets = [10, 0], sizes = [16, 128], strides = [1, 1]} : vector<48x128xf32> to vector<16x128xf32>
    %c12_89 = arith.constant 12 : index
    %c0_90 = arith.constant 0 : index
    %448 = vector.load %arg4[%c12_89, %c0_90] : memref<49x128xf32, #tpu.memory_space<vmem>>, vector<1x128xf32>
    %449 = vector.shape_cast %448 : vector<1x128xf32> to vector<128xf32>
    %450 = vector.shape_cast %449 : vector<128xf32> to vector<1x128xf32>
    %451 = vector.broadcast %450 : vector<1x128xf32> to vector<16x128xf32>
    %452 = arith.mulf %447, %451 : vector<16x128xf32>
    %453 = arith.addf %446, %452 : vector<16x128xf32>
    %454 = vector.extract_strided_slice %439 {offsets = [13, 0], sizes = [16, 128], strides = [1, 1]} : vector<48x128xf32> to vector<16x128xf32>
    %c19_91 = arith.constant 19 : index
    %c0_92 = arith.constant 0 : index
    %455 = vector.load %arg4[%c19_91, %c0_92] : memref<49x128xf32, #tpu.memory_space<vmem>>, vector<1x128xf32>
    %456 = vector.shape_cast %455 : vector<1x128xf32> to vector<128xf32>
    %457 = vector.shape_cast %456 : vector<128xf32> to vector<1x128xf32>
    %458 = vector.broadcast %457 : vector<1x128xf32> to vector<16x128xf32>
    %459 = arith.mulf %454, %458 : vector<16x128xf32>
    %460 = arith.addf %453, %459 : vector<16x128xf32>
    %461 = vector.extract_strided_slice %439 {offsets = [16, 0], sizes = [16, 128], strides = [1, 1]} : vector<48x128xf32> to vector<16x128xf32>
    %c26 = arith.constant 26 : index
    %c0_93 = arith.constant 0 : index
    %462 = vector.load %arg4[%c26, %c0_93] : memref<49x128xf32, #tpu.memory_space<vmem>>, vector<1x128xf32>
    %463 = vector.shape_cast %462 : vector<1x128xf32> to vector<128xf32>
    %464 = vector.shape_cast %463 : vector<128xf32> to vector<1x128xf32>
    %465 = vector.broadcast %464 : vector<1x128xf32> to vector<16x128xf32>
    %466 = arith.mulf %461, %465 : vector<16x128xf32>
    %467 = arith.addf %460, %466 : vector<16x128xf32>
    %468 = vector.extract_strided_slice %439 {offsets = [19, 0], sizes = [16, 128], strides = [1, 1]} : vector<48x128xf32> to vector<16x128xf32>
    %c33 = arith.constant 33 : index
    %c0_94 = arith.constant 0 : index
    %469 = vector.load %arg4[%c33, %c0_94] : memref<49x128xf32, #tpu.memory_space<vmem>>, vector<1x128xf32>
    %470 = vector.shape_cast %469 : vector<1x128xf32> to vector<128xf32>
    %471 = vector.shape_cast %470 : vector<128xf32> to vector<1x128xf32>
    %472 = vector.broadcast %471 : vector<1x128xf32> to vector<16x128xf32>
    %473 = arith.mulf %468, %472 : vector<16x128xf32>
    %474 = arith.addf %467, %473 : vector<16x128xf32>
    %475 = vector.extract_strided_slice %439 {offsets = [22, 0], sizes = [16, 128], strides = [1, 1]} : vector<48x128xf32> to vector<16x128xf32>
    %c40 = arith.constant 40 : index
    %c0_95 = arith.constant 0 : index
    %476 = vector.load %arg4[%c40, %c0_95] : memref<49x128xf32, #tpu.memory_space<vmem>>, vector<1x128xf32>
    %477 = vector.shape_cast %476 : vector<1x128xf32> to vector<128xf32>
    %478 = vector.shape_cast %477 : vector<128xf32> to vector<1x128xf32>
    %479 = vector.broadcast %478 : vector<1x128xf32> to vector<16x128xf32>
    %480 = arith.mulf %475, %479 : vector<16x128xf32>
    %481 = arith.addf %474, %480 : vector<16x128xf32>
    %482 = vector.extract_strided_slice %439 {offsets = [25, 0], sizes = [16, 128], strides = [1, 1]} : vector<48x128xf32> to vector<16x128xf32>
    %c47 = arith.constant 47 : index
    %c0_96 = arith.constant 0 : index
    %483 = vector.load %arg4[%c47, %c0_96] : memref<49x128xf32, #tpu.memory_space<vmem>>, vector<1x128xf32>
    %484 = vector.shape_cast %483 : vector<1x128xf32> to vector<128xf32>
    %485 = vector.shape_cast %484 : vector<128xf32> to vector<1x128xf32>
    %486 = vector.broadcast %485 : vector<1x128xf32> to vector<16x128xf32>
    %487 = arith.mulf %482, %486 : vector<16x128xf32>
    %488 = arith.addf %481, %487 : vector<16x128xf32>
    %c56_i32 = arith.constant 56 : i32
    %489 = tpu.dynamic_rotate %188 by %c56_i32 dim 1 : vector<48x128xf32>, i32 -> vector<48x128xf32>
    %490 = vector.extract_strided_slice %489 {offsets = [7, 0], sizes = [16, 128], strides = [1, 1]} : vector<48x128xf32> to vector<16x128xf32>
    %c6_97 = arith.constant 6 : index
    %c0_98 = arith.constant 0 : index
    %491 = vector.load %arg4[%c6_97, %c0_98] : memref<49x128xf32, #tpu.memory_space<vmem>>, vector<1x128xf32>
    %492 = vector.shape_cast %491 : vector<1x128xf32> to vector<128xf32>
    %493 = vector.shape_cast %492 : vector<128xf32> to vector<1x128xf32>
    %494 = vector.broadcast %493 : vector<1x128xf32> to vector<16x128xf32>
    %495 = arith.mulf %490, %494 : vector<16x128xf32>
    %496 = arith.addf %488, %495 : vector<16x128xf32>
    %497 = vector.extract_strided_slice %489 {offsets = [10, 0], sizes = [16, 128], strides = [1, 1]} : vector<48x128xf32> to vector<16x128xf32>
    %c13_99 = arith.constant 13 : index
    %c0_100 = arith.constant 0 : index
    %498 = vector.load %arg4[%c13_99, %c0_100] : memref<49x128xf32, #tpu.memory_space<vmem>>, vector<1x128xf32>
    %499 = vector.shape_cast %498 : vector<1x128xf32> to vector<128xf32>
    %500 = vector.shape_cast %499 : vector<128xf32> to vector<1x128xf32>
    %501 = vector.broadcast %500 : vector<1x128xf32> to vector<16x128xf32>
    %502 = arith.mulf %497, %501 : vector<16x128xf32>
    %503 = arith.addf %496, %502 : vector<16x128xf32>
    %504 = vector.extract_strided_slice %489 {offsets = [13, 0], sizes = [16, 128], strides = [1, 1]} : vector<48x128xf32> to vector<16x128xf32>
    %c20_101 = arith.constant 20 : index
    %c0_102 = arith.constant 0 : index
    %505 = vector.load %arg4[%c20_101, %c0_102] : memref<49x128xf32, #tpu.memory_space<vmem>>, vector<1x128xf32>
    %506 = vector.shape_cast %505 : vector<1x128xf32> to vector<128xf32>
    %507 = vector.shape_cast %506 : vector<128xf32> to vector<1x128xf32>
    %508 = vector.broadcast %507 : vector<1x128xf32> to vector<16x128xf32>
    %509 = arith.mulf %504, %508 : vector<16x128xf32>
    %510 = arith.addf %503, %509 : vector<16x128xf32>
    %511 = vector.extract_strided_slice %489 {offsets = [16, 0], sizes = [16, 128], strides = [1, 1]} : vector<48x128xf32> to vector<16x128xf32>
    %c27 = arith.constant 27 : index
    %c0_103 = arith.constant 0 : index
    %512 = vector.load %arg4[%c27, %c0_103] : memref<49x128xf32, #tpu.memory_space<vmem>>, vector<1x128xf32>
    %513 = vector.shape_cast %512 : vector<1x128xf32> to vector<128xf32>
    %514 = vector.shape_cast %513 : vector<128xf32> to vector<1x128xf32>
    %515 = vector.broadcast %514 : vector<1x128xf32> to vector<16x128xf32>
    %516 = arith.mulf %511, %515 : vector<16x128xf32>
    %517 = arith.addf %510, %516 : vector<16x128xf32>
    %518 = vector.extract_strided_slice %489 {offsets = [19, 0], sizes = [16, 128], strides = [1, 1]} : vector<48x128xf32> to vector<16x128xf32>
    %c34 = arith.constant 34 : index
    %c0_104 = arith.constant 0 : index
    %519 = vector.load %arg4[%c34, %c0_104] : memref<49x128xf32, #tpu.memory_space<vmem>>, vector<1x128xf32>
    %520 = vector.shape_cast %519 : vector<1x128xf32> to vector<128xf32>
    %521 = vector.shape_cast %520 : vector<128xf32> to vector<1x128xf32>
    %522 = vector.broadcast %521 : vector<1x128xf32> to vector<16x128xf32>
    %523 = arith.mulf %518, %522 : vector<16x128xf32>
    %524 = arith.addf %517, %523 : vector<16x128xf32>
    %525 = vector.extract_strided_slice %489 {offsets = [22, 0], sizes = [16, 128], strides = [1, 1]} : vector<48x128xf32> to vector<16x128xf32>
    %c41 = arith.constant 41 : index
    %c0_105 = arith.constant 0 : index
    %526 = vector.load %arg4[%c41, %c0_105] : memref<49x128xf32, #tpu.memory_space<vmem>>, vector<1x128xf32>
    %527 = vector.shape_cast %526 : vector<1x128xf32> to vector<128xf32>
    %528 = vector.shape_cast %527 : vector<128xf32> to vector<1x128xf32>
    %529 = vector.broadcast %528 : vector<1x128xf32> to vector<16x128xf32>
    %530 = arith.mulf %525, %529 : vector<16x128xf32>
    %531 = arith.addf %524, %530 : vector<16x128xf32>
    %532 = vector.extract_strided_slice %489 {offsets = [25, 0], sizes = [16, 128], strides = [1, 1]} : vector<48x128xf32> to vector<16x128xf32>
    %c48 = arith.constant 48 : index
    %c0_106 = arith.constant 0 : index
    %533 = vector.load %arg4[%c48, %c0_106] : memref<49x128xf32, #tpu.memory_space<vmem>>, vector<1x128xf32>
    %534 = vector.shape_cast %533 : vector<1x128xf32> to vector<128xf32>
    %535 = vector.shape_cast %534 : vector<128xf32> to vector<1x128xf32>
    %536 = vector.broadcast %535 : vector<1x128xf32> to vector<16x128xf32>
    %537 = arith.mulf %532, %536 : vector<16x128xf32>
    %538 = arith.addf %531, %537 : vector<16x128xf32>
    %c0_107 = arith.constant 0 : index
    %c0_108 = arith.constant 0 : index
    %539 = vector.load %arg5[%c0_107, %c0_108] : memref<1x128xf32, #tpu.memory_space<vmem>>, vector<1x128xf32>
    %540 = vector.broadcast %539 : vector<1x128xf32> to vector<16x128xf32>
    %541 = arith.addf %538, %540 : vector<16x128xf32>
    %c0_109 = arith.constant 0 : index
    %c0_110 = arith.constant 0 : index
    %542 = vector.load %arg6[%c0_109, %c0_110] : memref<3x128xf32, #tpu.memory_space<vmem>>, vector<1x128xf32>
    %543 = vector.shape_cast %542 : vector<1x128xf32> to vector<128xf32>
    %544 = vector.shape_cast %543 : vector<128xf32> to vector<1x128xf32>
    %545 = vector.broadcast %544 : vector<1x128xf32> to vector<16x128xf32>
    %546 = arith.mulf %186, %545 : vector<16x128xf32>
    %c1_111 = arith.constant 1 : index
    %c0_112 = arith.constant 0 : index
    %547 = vector.load %arg6[%c1_111, %c0_112] : memref<3x128xf32, #tpu.memory_space<vmem>>, vector<1x128xf32>
    %548 = vector.shape_cast %547 : vector<1x128xf32> to vector<128xf32>
    %549 = vector.shape_cast %548 : vector<128xf32> to vector<1x128xf32>
    %550 = vector.broadcast %549 : vector<1x128xf32> to vector<16x128xf32>
    %551 = arith.mulf %541, %550 : vector<16x128xf32>
    %552 = arith.addf %546, %551 : vector<16x128xf32>
    %c2_113 = arith.constant 2 : index
    %c0_114 = arith.constant 0 : index
    %553 = vector.load %arg6[%c2_113, %c0_114] : memref<3x128xf32, #tpu.memory_space<vmem>>, vector<1x128xf32>
    %554 = vector.shape_cast %553 : vector<1x128xf32> to vector<128xf32>
    %555 = vector.shape_cast %554 : vector<128xf32> to vector<1x128xf32>
    %556 = vector.broadcast %555 : vector<1x128xf32> to vector<16x128xf32>
    %557 = arith.mulf %1, %556 : vector<16x128xf32>
    %558 = arith.addf %552, %557 : vector<16x128xf32>
    %cst_115 = arith.constant dense<0.000000e+00> : vector<16xf32>
    %559 = vector.multi_reduction <add>, %558, %cst_115 [1] : vector<16x128xf32> to vector<16xf32>
    %560 = vector.shape_cast %559 : vector<16xf32> to vector<16x1xf32>
    %cst_116 = arith.constant dense<0.000000e+00> : vector<1xf32>
    %561 = vector.multi_reduction <add>, %560, %cst_116 [0] : vector<16x1xf32> to vector<1xf32>
    %562 = vector.shape_cast %561 : vector<1xf32> to vector<1x1xf32>
    %c0_117 = arith.constant 0 : index
    %c0_118 = arith.constant 0 : index
    %563 = vector.load %arg7[%c0_117, %c0_118] : memref<1x1xf32, #tpu.memory_space<vmem>>, vector<1x1xf32>
    %564 = arith.addf %562, %563 : vector<1x1xf32>
    %cst_119 = arith.constant 0.000000e+00 : f32
    %565 = vector.broadcast %cst_119 : f32 to vector<1x1xf32>
    %566 = arith.maximumf %564, %565 : vector<1x1xf32>
    %c0_120 = arith.constant 0 : index
    %c0_121 = arith.constant 0 : index
    %567 = vector.load %arg8[%c0_120, %c0_121] : memref<3x128xf32, #tpu.memory_space<vmem>>, vector<1x128xf32>
    %568 = vector.broadcast %566 : vector<1x1xf32> to vector<1x128xf32>
    %569 = arith.mulf %568, %567 : vector<1x128xf32>
    %c0_122 = arith.constant 0 : index
    %c0_123 = arith.constant 0 : index
    %570 = vector.load %arg9[%c0_122, %c0_123] : memref<3x128xf32, #tpu.memory_space<vmem>>, vector<1x128xf32>
    %571 = arith.addf %569, %570 : vector<1x128xf32>
    %cst_124 = arith.constant 0.000000e+00 : f32
    %572 = vector.broadcast %cst_124 : f32 to vector<1x128xf32>
    %573 = arith.subf %572, %571 : vector<1x128xf32>
    %574 = math.exp %573 : vector<1x128xf32>
    %cst_125 = arith.constant 1.000000e+00 : f32
    %575 = vector.broadcast %cst_125 : f32 to vector<1x128xf32>
    %576 = arith.addf %575, %574 : vector<1x128xf32>
    %cst_126 = arith.constant 1.000000e+00 : f32
    %577 = vector.broadcast %cst_126 : f32 to vector<1x128xf32>
    %578 = arith.divf %577, %576 : vector<1x128xf32>
    %c1_127 = arith.constant 1 : index
    %c0_128 = arith.constant 0 : index
    %579 = vector.load %arg8[%c1_127, %c0_128] : memref<3x128xf32, #tpu.memory_space<vmem>>, vector<1x128xf32>
    %580 = vector.broadcast %566 : vector<1x1xf32> to vector<1x128xf32>
    %581 = arith.mulf %580, %579 : vector<1x128xf32>
    %c1_129 = arith.constant 1 : index
    %c0_130 = arith.constant 0 : index
    %582 = vector.load %arg9[%c1_129, %c0_130] : memref<3x128xf32, #tpu.memory_space<vmem>>, vector<1x128xf32>
    %583 = arith.addf %581, %582 : vector<1x128xf32>
    %cst_131 = arith.constant 0.000000e+00 : f32
    %584 = vector.broadcast %cst_131 : f32 to vector<1x128xf32>
    %585 = arith.subf %584, %583 : vector<1x128xf32>
    %586 = math.exp %585 : vector<1x128xf32>
    %cst_132 = arith.constant 1.000000e+00 : f32
    %587 = vector.broadcast %cst_132 : f32 to vector<1x128xf32>
    %588 = arith.addf %587, %586 : vector<1x128xf32>
    %cst_133 = arith.constant 1.000000e+00 : f32
    %589 = vector.broadcast %cst_133 : f32 to vector<1x128xf32>
    %590 = arith.divf %589, %588 : vector<1x128xf32>
    %c2_134 = arith.constant 2 : index
    %c0_135 = arith.constant 0 : index
    %591 = vector.load %arg8[%c2_134, %c0_135] : memref<3x128xf32, #tpu.memory_space<vmem>>, vector<1x128xf32>
    %592 = vector.broadcast %566 : vector<1x1xf32> to vector<1x128xf32>
    %593 = arith.mulf %592, %591 : vector<1x128xf32>
    %c2_136 = arith.constant 2 : index
    %c0_137 = arith.constant 0 : index
    %594 = vector.load %arg9[%c2_136, %c0_137] : memref<3x128xf32, #tpu.memory_space<vmem>>, vector<1x128xf32>
    %595 = arith.addf %593, %594 : vector<1x128xf32>
    %cst_138 = arith.constant 0.000000e+00 : f32
    %596 = vector.broadcast %cst_138 : f32 to vector<1x128xf32>
    %597 = arith.subf %596, %595 : vector<1x128xf32>
    %598 = math.exp %597 : vector<1x128xf32>
    %cst_139 = arith.constant 1.000000e+00 : f32
    %599 = vector.broadcast %cst_139 : f32 to vector<1x128xf32>
    %600 = arith.addf %599, %598 : vector<1x128xf32>
    %cst_140 = arith.constant 1.000000e+00 : f32
    %601 = vector.broadcast %cst_140 : f32 to vector<1x128xf32>
    %602 = arith.divf %601, %600 : vector<1x128xf32>
    %603 = vector.broadcast %578 : vector<1x128xf32> to vector<16x128xf32>
    %604 = arith.mulf %186, %603 : vector<16x128xf32>
    %c0_141 = arith.constant 0 : index
    %c0_142 = arith.constant 0 : index
    %c0_143 = arith.constant 0 : index
    %605 = vector.load %arg10[%c0_141, %c0_142, %c0_143] : memref<3x128x128xf32, #tpu.memory_space<vmem>>, vector<1x128x128xf32>
    %606 = vector.shape_cast %605 : vector<1x128x128xf32> to vector<128x128xf32>
    %cst_144 = arith.constant dense<0.000000e+00> : vector<16x128xf32>
    %607 = tpu.matmul %604, %606, %cst_144 {dimension_numbers = #tpu.dot_dimension_numbers<[1], [0], [0], [1], [0, 0, 1, 1], [], []>} : vector<16x128xf32>, vector<128x128xf32>, vector<16x128xf32> -> vector<16x128xf32>
    %608 = vector.broadcast %590 : vector<1x128xf32> to vector<16x128xf32>
    %609 = arith.mulf %541, %608 : vector<16x128xf32>
    %c1_145 = arith.constant 1 : index
    %c0_146 = arith.constant 0 : index
    %c0_147 = arith.constant 0 : index
    %610 = vector.load %arg10[%c1_145, %c0_146, %c0_147] : memref<3x128x128xf32, #tpu.memory_space<vmem>>, vector<1x128x128xf32>
    %611 = vector.shape_cast %610 : vector<1x128x128xf32> to vector<128x128xf32>
    %cst_148 = arith.constant dense<0.000000e+00> : vector<16x128xf32>
    %612 = tpu.matmul %609, %611, %cst_148 {dimension_numbers = #tpu.dot_dimension_numbers<[1], [0], [0], [1], [0, 0, 1, 1], [], []>} : vector<16x128xf32>, vector<128x128xf32>, vector<16x128xf32> -> vector<16x128xf32>
    %613 = arith.addf %607, %612 : vector<16x128xf32>
    %614 = vector.broadcast %602 : vector<1x128xf32> to vector<16x128xf32>
    %615 = arith.mulf %1, %614 : vector<16x128xf32>
    %c2_149 = arith.constant 2 : index
    %c0_150 = arith.constant 0 : index
    %c0_151 = arith.constant 0 : index
    %616 = vector.load %arg10[%c2_149, %c0_150, %c0_151] : memref<3x128x128xf32, #tpu.memory_space<vmem>>, vector<1x128x128xf32>
    %617 = vector.shape_cast %616 : vector<1x128x128xf32> to vector<128x128xf32>
    %cst_152 = arith.constant dense<0.000000e+00> : vector<16x128xf32>
    %618 = tpu.matmul %615, %617, %cst_152 {dimension_numbers = #tpu.dot_dimension_numbers<[1], [0], [0], [1], [0, 0, 1, 1], [], []>} : vector<16x128xf32>, vector<128x128xf32>, vector<16x128xf32> -> vector<16x128xf32>
    %619 = arith.addf %613, %618 : vector<16x128xf32>
    %c0_153 = arith.constant 0 : index
    %c0_154 = arith.constant 0 : index
    %620 = vector.load %arg11[%c0_153, %c0_154] : memref<1x128xf32, #tpu.memory_space<vmem>>, vector<1x128xf32>
    %621 = vector.broadcast %620 : vector<1x128xf32> to vector<16x128xf32>
    %622 = arith.addf %619, %621 : vector<16x128xf32>
    %623 = arith.mulf %1, %622 : vector<16x128xf32>
    %c0_155 = arith.constant 0 : index
    %c0_156 = arith.constant 0 : index
    %c0_157 = arith.constant 0 : index
    %624 = vector.load %arg12[%c0_155, %c0_156, %c0_157] : memref<1x16x128xf32, #tpu.memory_space<vmem>>, vector<1x16x128xf32>
    %625 = vector.shape_cast %624 : vector<1x16x128xf32> to vector<16x128xf32>
    %626 = vector.shape_cast %623 : vector<16x128xf32> to vector<1x16x128xf32>
    tpu.vector_store %arg12[%c0_155, %c0_156, %c0_157], %626 {strides = array<i32>} : memref<1x16x128xf32, #tpu.memory_space<vmem>>, vector<1x16x128xf32>,
    return
  }
  func.func @transform_0(%arg0: i32) -> (i32, i32, i32) {
    %c0_i32 = arith.constant 0 : i32
    %c0_i32_0 = arith.constant 0 : i32
    %c0_i32_1 = arith.constant 0 : i32
    return %arg0, %c0_i32, %c0_i32_0 : i32, i32, i32
  }
  func.func @transform_1(%arg0: i32) -> (i32, i32) {
    %c0_i32 = arith.constant 0 : i32
    %c0_i32_0 = arith.constant 0 : i32
    %c0_i32_1 = arith.constant 0 : i32
    return %c0_i32, %c0_i32_0 : i32, i32
  }
  func.func @transform_2(%arg0: i32) -> (i32, i32) {
    %c0_i32 = arith.constant 0 : i32
    %c0_i32_0 = arith.constant 0 : i32
    %c0_i32_1 = arith.constant 0 : i32
    return %c0_i32, %c0_i32_0 : i32, i32
  }
  func.func @transform_3(%arg0: i32) -> (i32, i32) {
    %c0_i32 = arith.constant 0 : i32
    %c0_i32_0 = arith.constant 0 : i32
    %c0_i32_1 = arith.constant 0 : i32
    return %c0_i32, %c0_i32_0 : i32, i32
  }
  func.func @transform_4(%arg0: i32) -> (i32, i32) {
    %c0_i32 = arith.constant 0 : i32
    %c0_i32_0 = arith.constant 0 : i32
    %c0_i32_1 = arith.constant 0 : i32
    return %c0_i32, %c0_i32_0 : i32, i32
  }
  func.func @transform_5(%arg0: i32) -> (i32, i32) {
    %c0_i32 = arith.constant 0 : i32
    %c0_i32_0 = arith.constant 0 : i32
    %c0_i32_1 = arith.constant 0 : i32
    return %c0_i32, %c0_i32_0 : i32, i32
  }
  func.func @transform_6(%arg0: i32) -> (i32, i32) {
    %c0_i32 = arith.constant 0 : i32
    %c0_i32_0 = arith.constant 0 : i32
    %c0_i32_1 = arith.constant 0 : i32
    return %c0_i32, %c0_i32_0 : i32, i32
  }
  func.func @transform_7(%arg0: i32) -> (i32, i32) {
    %c0_i32 = arith.constant 0 : i32
    %c0_i32_0 = arith.constant 0 : i32
    %c0_i32_1 = arith.constant 0 : i32
    return %c0_i32, %c0_i32_0 : i32, i32
  }
  func.func @transform_8(%arg0: i32) -> (i32, i32) {
    %c0_i32 = arith.constant 0 : i32
    %c0_i32_0 = arith.constant 0 : i32
    %c0_i32_1 = arith.constant 0 : i32
    return %c0_i32, %c0_i32_0 : i32, i32
  }
  func.func @transform_9(%arg0: i32) -> (i32, i32, i32) {
    %c0_i32 = arith.constant 0 : i32
    %c0_i32_0 = arith.constant 0 : i32
    %c0_i32_1 = arith.constant 0 : i32
    %c0_i32_2 = arith.constant 0 : i32
    return %c0_i32, %c0_i32_0, %c0_i32_1 : i32, i32, i32
  }
  func.func @transform_10(%arg0: i32) -> (i32, i32) {
    %c0_i32 = arith.constant 0 : i32
    %c0_i32_0 = arith.constant 0 : i32
    %c0_i32_1 = arith.constant 0 : i32
    return %c0_i32, %c0_i32_0 : i32, i32
  }
  func.func @transform_11(%arg0: i32) -> (i32, i32, i32) {
    %c0_i32 = arith.constant 0 : i32
    %c0_i32_0 = arith.constant 0 : i32
    %c0_i32_1 = arith.constant 0 : i32
    return %arg0, %c0_i32, %c0_i32_0 : i32, i32, i32
  }
}

</mosaic_0001>

<bundles_post_ra>
// kernel: lka_pallas.1
= control target key start
LH: loop header
LB: loop body
LE: loop exit
PB: predicated region body
PF: predicated region fallthrough
CT: control target
= control target key end

     0   :  { %s2809_s19 = smov 0   ;;  %s3839_s0 = inlined_call_operand.vmem [shape: f32[2,16,128], index: 0, kind: input, shape index: {}]   ;;  %s3840_s1 = inlined_call_operand.vmem [shape: f32[25,128], index: 1, kind: input, shape index: {}]   ;;  %s3841_s2 = inlined_call_operand.vmem [shape: f32[1,128], index: 2, kind: input, shape index: {}]   ;;  %s3842_s3 = inlined_call_operand.vmem [shape: f32[49,128], index: 3, kind: input, shape index: {}]   ;;  %s3843_s4 = inlined_call_operand.vmem [shape: f32[1,128], index: 4, kind: input, shape index: {}]   ;;  %s3844_s5 = inlined_call_operand.vmem [shape: f32[3,128], index: 5, kind: input, shape index: {}]   ;;  %s3845_s6 = inlined_call_operand.<no memory space> [shape: f32[1,1], index: 6, kind: input, shape index: {}]   ;;  %s3846_s7 = inlined_call_operand.vmem [shape: f32[3,128], index: 7, kind: input, shape index: {}]   ;;  %s3847_s8 = inlined_call_operand.vmem [shape: f32[3,128], index: 8, kind: input, shape index: {}]   ;;  %s3848_s9 = inlined_call_operand.vmem [shape: f32[3,128,128], index: 9, kind: input, shape index: {}]   ;;  %s3849_s10 = inlined_call_operand.vmem [shape: f32[1,128], index: 10, kind: input, shape index: {}]   ;;  %s3850_s11 = inlined_call_operand.vmem [shape: f32[2,16,128], index: 11, kind: output, shape index: {}]  }
   0x1   :  { %v16_v0 = vstv %s3845_s6 }
   0x2   :  { %17 = vst [vmem:[#allocation2] sm:$0x1] %v16_v0 }
   0x3 LB: > { %s2407_s20 = sadd.s32 4294967295, %s2732_s19   ;;  %p2411_p0 = scmp.ge.s32.totalorder %s2732_s19, 1  ;;  %s2732_s19 = sphi %s2809_s19, %s23_s19  }
   0x4   : > { %p339_p1 = scmp.lt.s32.totalorder %s2732_s19, 3 }
   0x6   : > { %p340_p2 = pnand %p2411_p0, %p339_p1 }
   0x8   : > { %343 = sbr.rel (%p340_p2) target bundleno = 999 (0x3e7), region = 64 }
   0xd   : > { %p379_p3 = scmp.lt.s32.totalorder %s2407_s20, 1  ;;  %v2734_v1 = vmov 0.0   ;;  %s2735_s21 = smov 16   ;;  %v2427_v4 = vld [vmem:[%s3840_s1 + $0x7] ss:$0 sm:$0xff]  ;;  %vm419_vm0 = vcmask 1046528  }
   0xe   : > { %391 = vrot.lane.b32.xlu0 %v2734_v1, %s2735_s21  ;;  %s2736_s25 = smov 8   ;;  %s2737_s26 = smov 120   ;;  %v613_v5 = vmul.f32 0.0, %v2427_v4  ;;  %v2428_v7 = vld [vmem:[%s3840_s1 + $0xc] ss:$0 sm:$0xff]  ;;  %vm440_vm1 = vcmask 1045504  }
   0xf   : > { %s3888_s20 = smov (!%p379_p3, %s2407_s20), 1  ;;  %s2738_s27 = smov 112   ;;  %v2429_v8 = vld [vmem:[%s3840_s1 + $0x11] ss:$0 sm:$0xff]  ;;  %v2430_v9 = vld [vmem:[%s3840_s1 + $0x16] ss:$0 sm:$0xff] }
  0x10   : > { %s2530_s6 = sshll.u32 %s3888_s20, 4  ;;  %s2739_s28 = smov 72   ;;  %v2426_v11 = vld [vmem:[%s3840_s1 + $0x2] ss:$0 sm:$0xff]  ;;  %v619_v12 = vrot.slane %v613_v5, 1  ;;  %v2860_v17 = vmul.f32 0.0, %v2429_v8 }
  0x11   : > { %s2826_s24 = scalar_lea.vmem %s3839_s0, %s2530_s6  ;;  %v2417_v14 = vld [vmem:[%s3840_s1 + $0x5] ss:$0 sm:$0xff]  ;;  %v2864_v19 = vmul.f32 0.0, %v2430_v9  ;;  %v2868_v21 = vmul.f32 0.0, %v2426_v11  ;;  %v2419_v23 = vld [vmem:[%s3840_s1 + $0xf] ss:$0 sm:$0xff] }
  0x12   : > { %v390_v2 = vld [vmem:[%s2826_s24 + $0x8] sm:$0xff]  ;;  %v389_v3 = vld [vmem:[%s2826_s24] sm:$0xff]  ;;  %vm461_vm2 = vcmask 1044480   ;;  %v2420_v29 = vld [vmem:[%s3840_s1 + $0x14] ss:$0 sm:$0xff]  ;;  %v662_v32 = vrot.slane %v2860_v17, 3 }
  0x13   : > { %395 = vrot.lane.b32.xlu1 %v390_v2, %s2735_s21  ;;  %393 = vrot.lane.b32.xlu0 %v389_v3, %s2735_s21  ;;  %v2838_v6 = vmul.f32 %v2427_v4, %v389_v3  ;;  %v2856_v15 = vmul.f32 %v2428_v7, %v390_v2  ;;  %v2858_v16 = vmul.f32 %v2429_v8, %v390_v2  ;;  %v2418_v25 = vld [vmem:[%s3840_s1 + $0xa] ss:$0 sm:$0xff]  ;;  %v684_v37 = vrot.slane %v2864_v19, 4  ;;  %v2416_v44 = vld [vmem:[%s3840_s1] ss:$0 sm:$0xff]  ;;  %s2740_s30 = smov 48  }
  0x14   : > { %v2862_v18 = vmul.f32 %v2430_v9, %v390_v2  ;;  %v2866_v20 = vmul.f32 %v2428_v7, %v389_v3  ;;  %v2870_v22 = vmul.f32 %v2426_v11, %v389_v3  ;;  %v2883_v27 = vmul.f32 %v2426_v11, %v390_v2  ;;  %v2422_v61 = vld [vmem:[%s3840_s1 + $0x6] ss:$0 sm:$0xff]  ;;  %s2741_s12 = smov 24   ;;  %s2742_s13 = smov 104  }
  0x15   : > { %v620_v13 = vrot.slane %v2838_v6, 1  ;;  %v2885_v28 = vmul.f32 %v2429_v8, %v389_v3  ;;  %v640_v30 = vrot.slane %v2856_v15, 2  ;;  %v660_v31 = vrot.slane %v2858_v16, 3  ;;  %s2743_s14 = smov 80   ;;  %s2744_s15 = smov 56  }
  0x16   : > { %v2893_v33 = vmul.f32 %v2427_v4, %v390_v2  ;;  %v682_v36 = vrot.slane %v2862_v18, 4  ;;  %v639_v38 = vrot.slane %v2866_v20, 2  ;;  %v2898_v39 = vmul.f32 %v2430_v9, %v389_v3  ;;  %v2421_v4 = vld [vmem:[%s3840_s1 + $0x1] ss:$0 sm:$0xff]  ;;  %v2437_v20 = vld [vmem:[%s3840_s1 + $0x9] ss:$0 sm:$0xff] }
  0x17   : > { %496 = vrot.lane.b32.xlu1 %v2734_v1, %s2736_s25  ;;  %498 = vrot.lane.b32.xlu0 %v389_v3, %s2736_s25  ;;  %v2881_v26 = vsel %vm419_vm0, %v619_v12, %v620_v13  ;;  %vm484_vm3 = vcmask 1043456   ;;  %vm907_vm4 = vcmask 1041408   ;;  %vm1025_vm5 = vcmask 1040384  }
  0x18   : > { %v641_v6 = vsel %vm440_vm1, %v639_v38, %v640_v30  ;;  %v685_v17 = vsel %vm484_vm3, %v682_v36, %v684_v37  ;;  %vm1954_vm6 = vcmask 1047558  }
  0x1b   : > { %500 = vrot.lane.b32.xlu1 %v390_v2, %s2736_s25  ;;  %692 = vrot.lane.b32.xlu0 %v2734_v1, %s2737_s26 }
  0x1f   : > { %694 = vrot.lane.b32.xlu1 %v389_v3, %s2737_s26  ;;  %696 = vrot.lane.b32.xlu0 %v390_v2, %s2737_s26 }
  0x23   : > { %793 = vrot.lane.b32.xlu1 %v2734_v1, %s2738_s27  ;;  %795 = vrot.lane.b32.xlu0 %v389_v3, %s2738_s27 }
  0x27   : > { %797 = vrot.lane.b32.xlu1 %v390_v2, %s2738_s27  ;;  %915 = vrot.lane.b32.xlu0 %v2734_v1, %s2739_s28 }
  0x80   : > { %v392_v10 = vpop.permute.xlu0 %391 }
  0x81   : > { %v413_v24 = vmul.f32 %v2417_v14, %v392_v10  ;;  %v457_v40 = vmul.f32 %v2419_v23, %v392_v10  ;;  %v480_v46 = vmul.f32 %v2420_v29, %v392_v10  ;;  %v402_v57 = vmul.f32 %v2416_v44, %v392_v10  ;;  %v2424_v10 = vld [vmem:[%s3840_s1 + $0x10] ss:$0 sm:$0xff] }
  0x83   : > { %v420_v45 = vrot.slane %v413_v24, 1  ;;  %v465_v63 = vrot.slane %v457_v40, 3  ;;  %v488_v5 = vrot.slane %v480_v46, 4 }
  0x85   : > { %v396_v34 = vpop.permute.xlu1 %395  ;;  %v394_v35 = vpop.permute.xlu0 %393 }
  0x86   : > { %v415_v41 = vmul.f32 %v2417_v14, %v396_v34  ;;  %v437_v42 = vmul.f32 %v2418_v25, %v396_v34  ;;  %v456_v43 = vmul.f32 %v2419_v23, %v396_v34  ;;  %v414_v47 = vmul.f32 %v2417_v14, %v394_v35 }
  0x87   : > { %v436_v48 = vmul.f32 %v2418_v25, %v394_v35  ;;  %v404_v49 = vmul.f32 %v2416_v44, %v396_v34  ;;  %v479_v51 = vmul.f32 %v2420_v29, %v396_v34  ;;  %v455_v52 = vmul.f32 %v2419_v23, %v394_v35  ;;  %v2423_v25 = vld [vmem:[%s3840_s1 + $0xb] ss:$0 sm:$0xff] }
  0x88   : > { %v423_v50 = vrot.slane %v415_v41, 1  ;;  %v442_v53 = vrot.slane %v437_v42, 2  ;;  %v421_v54 = vrot.slane %v414_v47, 1  ;;  %v478_v56 = vmul.f32 %v2420_v29, %v394_v35 }
  0x89   : > { %v441_v55 = vrot.slane %v436_v48, 2  ;;  %v463_v59 = vrot.slane %v456_v43, 3  ;;  %v403_v60 = vmul.f32 %v2416_v44, %v394_v35  ;;  %v497_v62 = vpop.permute.xlu1 %496  ;;  %v462_v3 = vrot.slane %v455_v52, 3  ;;  %v499_v11 = vpop.permute.xlu0 %498 }
  0x8a   : > { %v430_v58 = vadd.f32 %v423_v50, %v404_v49  ;;  %v422_v0 = vsel %vm419_vm0, %v420_v45, %v421_v54  ;;  %v424_v2 = vsel %vm419_vm0, %v421_v54, %v423_v50  ;;  %v486_v12 = vrot.slane %v479_v51, 4  ;;  %v2425_v54 = vld [vmem:[%s3840_s1 + $0x15] ss:$0 sm:$0xff] }
  0x8b   : > { %v428_v8 = vadd.f32 %v422_v0, %v402_v57  ;;  %v429_v9 = vadd.f32 %v424_v2, %v403_v60  ;;  %v443_v14 = vsel %vm440_vm1, %v441_v55, %v442_v53  ;;  %v485_v23 = vrot.slane %v478_v56, 4 }
  0x8c   : > { %v449_v7 = vadd.f32 %v442_v53, %v430_v58  ;;  %v518_v24 = vmul.f32 %v2422_v61, %v497_v62  ;;  %v466_v29 = vsel %vm461_vm2, %v463_v59, %v465_v63  ;;  %v507_v40 = vmul.f32 %v2421_v4, %v497_v62 }
  0x8d   : > { %v447_v34 = vadd.f32 %v441_v55, %v428_v8  ;;  %v448_v35 = vadd.f32 %v443_v14, %v429_v9  ;;  %v464_v42 = vsel %vm461_vm2, %v462_v3, %v463_v59  ;;  %v560_v43 = vmul.f32 %v2424_v10, %v497_v62  ;;  %v501_v49 = vpop.permute.xlu1 %500 }
  0x8e   : > { %v472_v41 = vadd.f32 %v466_v29, %v449_v7  ;;  %v519_v44 = vmul.f32 %v2422_v61, %v499_v11  ;;  %v508_v47 = vmul.f32 %v2421_v4, %v499_v11  ;;  %v540_v48 = vmul.f32 %v2423_v25, %v499_v11 }
  0x8f   : > { %v470_v45 = vadd.f32 %v462_v3, %v447_v34  ;;  %v471_v46 = vadd.f32 %v464_v42, %v448_v35  ;;  %v524_v50 = vrot.slane %v518_v24, 1  ;;  %v487_v51 = vsel %vm484_vm3, %v485_v23, %v486_v12 }
  0x90   : > { %v525_v52 = vrot.slane %v519_v44, 1  ;;  %v509_v53 = vmul.f32 %v2421_v4, %v501_v49  ;;  %v558_v57 = vmul.f32 %v2424_v10, %v499_v11  ;;  %v489_v58 = vsel %vm484_vm3, %v486_v12, %v488_v5 }
  0x91   : > { %v493_v55 = vadd.f32 %v485_v23, %v470_v45  ;;  %v494_v56 = vadd.f32 %v487_v51, %v471_v46  ;;  %v544_v59 = vrot.slane %v540_v48, 2  ;;  %v580_v60 = vmul.f32 %v2425_v54, %v499_v11 }
  0x92   : > { %v495_v63 = vadd.f32 %v489_v58, %v472_v41  ;;  %v520_v0 = vmul.f32 %v2422_v61, %v501_v49  ;;  %v541_v7 = vmul.f32 %v2423_v25, %v501_v49  ;;  %v559_v8 = vmul.f32 %v2424_v10, %v501_v49 }
  0x93   : > { %v510_v2 = vadd.f32 %v507_v40, %v493_v55  ;;  %v511_v3 = vadd.f32 %v508_v47, %v494_v56  ;;  %v526_v9 = vsel %vm419_vm0, %v524_v50, %v525_v52  ;;  %v581_v24 = vmul.f32 %v2425_v54, %v501_v49 }
  0x94   : > { %v512_v4 = vadd.f32 %v509_v53, %v495_v63  ;;  %v527_v14 = vrot.slane %v520_v0, 1  ;;  %v582_v29 = vmul.f32 %v2425_v54, %v497_v62  ;;  %v545_v23 = vrot.slane %v541_v7, 2  ;;  %v2432_v62 = vld [vmem:[%s3840_s1 + $0x8] ss:$0 sm:$0xff]  ;;  %v695_v0 = vpop.permute.xlu1 %694 }
  0x95   : > { %v532_v34 = vadd.f32 %v526_v9, %v510_v2  ;;  %v565_v35 = vrot.slane %v559_v8, 3  ;;  %v564_v42 = vrot.slane %v558_v57, 3  ;;  %v622_v11 = vrot.slane %v2893_v33, 1  ;;  %v2434_v33 = vld [vmem:[%s3840_s1 + $0x12] ss:$0 sm:$0xff] }
  0x96   : > { %v528_v5 = vsel %vm419_vm0, %v525_v52, %v527_v14  ;;  %v534_v12 = vadd.f32 %v527_v14, %v512_v4  ;;  %v567_v61 = vrot.slane %v560_v43, 3  ;;  %v587_v25 = vrot.slane %v581_v24, 4  ;;  %v693_v43 = vpop.permute.xlu0 %692  ;;  %v2431_v57 = vld [vmem:[%s3840_s1 + $0x3] ss:$0 sm:$0xff]  ;;  %v2435_v2 = vld [vmem:[%s3840_s1 + $0x17] ss:$0 sm:$0xff] }
  0x97   : > { %v550_v40 = vadd.f32 %v544_v59, %v532_v34  ;;  %v533_v41 = vadd.f32 %v528_v5, %v511_v3  ;;  %v586_v10 = vrot.slane %v580_v60, 4  ;;  %v546_v44 = vsel %vm440_vm1, %v544_v59, %v545_v23 }
  0x98   : > { %v552_v45 = vadd.f32 %v545_v23, %v534_v12  ;;  %v659_v46 = vrot.slane %v2885_v28, 3  ;;  %v589_v47 = vrot.slane %v582_v29, 4  ;;  %v568_v50 = vsel %vm461_vm2, %v565_v35, %v567_v61 }
  0x99   : > { %v572_v48 = vadd.f32 %v564_v42, %v550_v40  ;;  %v551_v49 = vadd.f32 %v546_v44, %v533_v41  ;;  %v566_v51 = vsel %vm461_vm2, %v564_v42, %v565_v35  ;;  %v681_v53 = vrot.slane %v2898_v39, 4  ;;  %v794_v41 = vpop.permute.xlu1 %793 }
  0x9a   : > { %v574_v52 = vadd.f32 %v568_v50, %v552_v45  ;;  %v623_v54 = vsel %vm419_vm0, %v620_v13, %v622_v11  ;;  %v590_v56 = vsel %vm484_vm3, %v587_v25, %v589_v47  ;;  %v714_v58 = vmul.f32 %v2432_v62, %v693_v43  ;;  %v697_v14 = vpop.permute.xlu0 %696 }
  0x9b   : > { %v594_v28 = vadd.f32 %v586_v10, %v572_v48  ;;  %v573_v55 = vadd.f32 %v566_v51, %v551_v49  ;;  %v588_v59 = vsel %vm484_vm3, %v586_v10, %v587_v25  ;;  %v2947_v63 = vmul.f32 %v2434_v33, %v693_v43  ;;  %v2436_v49 = vld [vmem:[%s3840_s1 + $0x4] ss:$0 sm:$0xff] }
  0x9c   : > { %v596_v60 = vadd.f32 %v590_v56, %v574_v52  ;;  %v661_v3 = vsel %vm461_vm2, %v659_v46, %v660_v31  ;;  %v663_v7 = vsel %vm461_vm2, %v660_v31, %v662_v32  ;;  %v703_v9 = vmul.f32 %v2431_v57, %v693_v43 }
  0x9d   : > { %v605_v13 = vadd.f32 %v2868_v21, %v594_v28  ;;  %v595_v39 = vadd.f32 %v588_v59, %v573_v55  ;;  %v2433_v21 = vld [vmem:[%s3840_s1 + $0xd] ss:$0 sm:$0xff]  ;;  %v683_v4 = vsel %vm484_vm3, %v681_v53, %v682_v36  ;;  %v715_v32 = vmul.f32 %v2432_v62, %v695_v0  ;;  %v2439_v59 = vld [vmem:[%s3840_s1 + $0x13] ss:$0 sm:$0xff] }
  0x9e   : > { %v607_v8 = vadd.f32 %v2883_v27, %v596_v60  ;;  %v720_v27 = vrot.slane %v714_v58, 1  ;;  %v763_v24 = vrot.slane %v2947_v63, 3  ;;  %v778_v29 = vmul.f32 %v2435_v2, %v693_v43  ;;  %v796_v55 = vpop.permute.xlu0 %795  ;;  %v2440_v60 = vld [vmem:[%s3840_s1 + $0x18] ss:$0 sm:$0xff] }
  0x9f   : > { %v627_v16 = vadd.f32 %v2881_v26, %v605_v13  ;;  %v606_v31 = vadd.f32 %v2870_v22, %v595_v39  ;;  %v716_v23 = vmul.f32 %v2432_v62, %v697_v14  ;;  %v736_v42 = vmul.f32 %v2433_v21, %v695_v0 }
  0xa0   : > { %v629_v34 = vadd.f32 %v622_v11, %v607_v8  ;;  %v737_v18 = vmul.f32 %v2433_v21, %v697_v14  ;;  %v704_v5 = vmul.f32 %v2431_v57, %v695_v0  ;;  %v754_v36 = vmul.f32 %v2434_v33, %v695_v0 }
  0xa1   : > { %v645_v35 = vadd.f32 %v639_v38, %v627_v16  ;;  %v628_v19 = vadd.f32 %v623_v54, %v606_v31  ;;  %v755_v22 = vmul.f32 %v2434_v33, %v697_v14  ;;  %v721_v61 = vrot.slane %v715_v32, 1 }
  0xa2   : > { %v647_v26 = vadd.f32 %v640_v30, %v629_v34  ;;  %v776_v40 = vmul.f32 %v2435_v2, %v695_v0  ;;  %v705_v11 = vmul.f32 %v2431_v57, %v697_v14  ;;  %v723_v10 = vrot.slane %v716_v23, 1  ;;  %v798_v0 = vpop.permute.xlu1 %797 }
  0xa3   : > { %v667_v37 = vadd.f32 %v659_v46, %v645_v35  ;;  %v646_v12 = vadd.f32 %v641_v6, %v628_v19  ;;  %v777_v44 = vmul.f32 %v2435_v2, %v697_v14  ;;  %v740_v62 = vrot.slane %v736_v42, 2  ;;  %v2438_v2 = vld [vmem:[%s3840_s1 + $0xe] ss:$0 sm:$0xff] }
  0xa4   : > { %v669_v25 = vadd.f32 %v663_v7, %v647_v26  ;;  %v741_v47 = vrot.slane %v737_v18, 2  ;;  %v785_v15 = vrot.slane %v778_v29, 4  ;;  %v760_v30 = vrot.slane %v754_v36, 3 }
  0xa5   : > { %v689_v38 = vadd.f32 %v681_v53, %v667_v37  ;;  %v668_v45 = vadd.f32 %v661_v3, %v646_v12  ;;  %v761_v46 = vrot.slane %v755_v22, 3  ;;  %v722_v43 = vsel %vm419_vm0, %v720_v27, %v721_v61 }
  0xa6   : > { %v691_v48 = vadd.f32 %v685_v17, %v669_v25  ;;  %v815_v51 = vmul.f32 %v2437_v20, %v794_v41  ;;  %v782_v52 = vrot.slane %v776_v40, 4  ;;  %v724_v53 = vsel %vm419_vm0, %v721_v61, %v723_v10 }
  0xa7   : > { %v706_v50 = vadd.f32 %v703_v9, %v689_v38  ;;  %v690_v33 = vadd.f32 %v683_v4, %v668_v45  ;;  %v783_v28 = vrot.slane %v777_v44, 4  ;;  %v742_v58 = vsel %vm440_vm1, %v740_v62, %v741_v47 }
  0xa8   : > { %v708_v54 = vadd.f32 %v705_v11, %v691_v48  ;;  %v804_v63 = vmul.f32 %v2436_v49, %v794_v41  ;;  %v762_v13 = vsel %vm461_vm2, %v760_v30, %v761_v46  ;;  %v764_v39 = vsel %vm461_vm2, %v761_v46, %v763_v24 }
  0xa9   : > { %v707_v56 = vadd.f32 %v704_v5, %v690_v33  ;;  %v728_v57 = vadd.f32 %v722_v43, %v706_v50  ;;  %v817_v3 = vmul.f32 %v2437_v20, %v798_v0  ;;  %v821_v9 = vrot.slane %v815_v51, 1 }
  0xaa   : > { %v730_v6 = vadd.f32 %v723_v10, %v708_v54  ;;  %v816_v21 = vmul.f32 %v2437_v20, %v796_v55  ;;  %v857_v17 = vmul.f32 %v2439_v59, %v794_v41  ;;  %v879_v16 = vmul.f32 %v2440_v60, %v794_v41 }
  0xab   : > { %v746_v7 = vadd.f32 %v740_v62, %v728_v57  ;;  %v729_v8 = vadd.f32 %v724_v53, %v707_v56  ;;  %v786_v31 = vsel %vm484_vm3, %v783_v28, %v785_v15  ;;  %v838_v14 = vmul.f32 %v2438_v2, %v798_v0 }
  0xac   : > { %v748_v4 = vadd.f32 %v741_v47, %v730_v6  ;;  %v837_v29 = vmul.f32 %v2438_v2, %v796_v55  ;;  %v806_v24 = vmul.f32 %v2436_v49, %v798_v0  ;;  %v824_v23 = vrot.slane %v817_v3, 1 }
  0xad   : > { %v768_v27 = vadd.f32 %v760_v30, %v746_v7  ;;  %v747_v32 = vadd.f32 %v742_v58, %v729_v8  ;;  %v822_v35 = vrot.slane %v816_v21, 1  ;;  %v856_v42 = vmul.f32 %v2439_v59, %v798_v0  ;;  %v3029_v7 = vld [vmem:[%s3842_s3 + $0xa] ss:$0 sm:$0xff]  ;;  %v3034_v8 = vld [vmem:[%s3842_s3 + $0x11] ss:$0 sm:$0xff] }
  0xae   : > { %v770_v34 = vadd.f32 %v764_v39, %v748_v4  ;;  %v805_v5 = vmul.f32 %v2436_v49, %v796_v55  ;;  %v878_v26 = vmul.f32 %v2440_v60, %v798_v0  ;;  %v784_v22 = vsel %vm484_vm3, %v782_v52, %v783_v28  ;;  %v2441_v28 = vld [vmem:[%s3841_s2] ss:$0 sm:$0xff]  ;;  %v3042_v21 = vld [vmem:[%s3842_s3 + $0x1f] ss:$0 sm:$0xff] }
  0xaf   : > { %v790_v19 = vadd.f32 %v782_v52, %v768_v27  ;;  %v769_v18 = vadd.f32 %v762_v13, %v747_v32  ;;  %v855_v37 = vmul.f32 %v2439_v59, %v796_v55  ;;  %v842_v61 = vrot.slane %v838_v14, 2 }
  0xb0   : > { %v792_v36 = vadd.f32 %v786_v31, %v770_v34  ;;  %v841_v41 = vrot.slane %v837_v29, 2  ;;  %v823_v11 = vsel %vm419_vm0, %v821_v9, %v822_v35  ;;  %v825_v10 = vsel %vm419_vm0, %v822_v35, %v824_v23  ;;  %v2466_v9 = vld [vmem:[%s3842_s3 + $0x18] ss:$0 sm:$0xff] }
  0xb1   : > { %v807_v12 = vadd.f32 %v804_v63, %v790_v19  ;;  %v791_v40 = vadd.f32 %v784_v22, %v769_v18  ;;  %v877_v44 = vmul.f32 %v2440_v60, %v796_v55  ;;  %v864_v20 = vrot.slane %v857_v17, 3 }
  0xb2   : > { %v809_v25 = vadd.f32 %v806_v24, %v792_v36  ;;  %v862_v38 = vrot.slane %v856_v42, 3  ;;  %v861_v15 = vrot.slane %v855_v37, 3  ;;  %v886_v30 = vrot.slane %v879_v16, 4 }
  0xb3   : > { %v808_v45 = vadd.f32 %v805_v5, %v791_v40  ;;  %v829_v62 = vadd.f32 %v823_v11, %v807_v12  ;;  %v884_v48 = vrot.slane %v878_v26, 4  ;;  %v843_v33 = vsel %vm440_vm1, %v841_v41, %v842_v61 }
  0xb4   : > { %v831_v47 = vadd.f32 %v824_v23, %v809_v25  ;;  %v883_v43 = vrot.slane %v877_v44, 4  ;;  %v865_v51 = vsel %vm461_vm2, %v862_v38, %v864_v20  ;;  %v863_v55 = vsel %vm461_vm2, %v861_v15, %v862_v38  ;;  %v3076_v23 = vld [vmem:[%s3842_s3 + $0x26] ss:$0 sm:$0xff]  ;;  %v2443_v20 = vld [vmem:[%s3842_s3 + $0x7] ss:$0 sm:$0xff]  ;;  %v916_v38 = vpop.permute.xlu0 %915 }
  0xb5   : > { %v830_v46 = vadd.f32 %v825_v10, %v808_v45  ;;  %v847_v49 = vadd.f32 %v841_v41, %v829_v62  ;;  %v887_v56 = vsel %vm484_vm3, %v884_v48, %v886_v30  ;;  %v935_v45 = vmul.f32 %v2443_v20, %v916_v38  ;;  %v2442_v62 = vld [vmem:[%s3842_s3] ss:$0 sm:$0xff] }
  0xb6   : > { %v849_v50 = vadd.f32 %v842_v61, %v831_v47  ;;  %v885_v60 = vsel %vm484_vm3, %v883_v43, %v884_v48  ;;  %v2444_v47 = vld [vmem:[%s3842_s3 + $0xe] ss:$0 sm:$0xff] }
  0xb7   : > { %v848_v52 = vadd.f32 %v843_v33, %v830_v46  ;;  %v869_v54 = vadd.f32 %v861_v15, %v847_v49  ;;  %v926_v15 = vmul.f32 %v2442_v62, %v916_v38  ;;  %v941_v30 = vrot.slane %v935_v45, 3  ;;  %v3171_v33 = vld [vmem:[%s3842_s3 + $0x2d] ss:$0 sm:$0xff] }
  0xb8   : > { %v871_v53 = vadd.f32 %v865_v51, %v849_v50  ;;  %v957_v48 = vmul.f32 %v2444_v47, %v916_v38  ;;  %v3160_v46 = vmul.f32 0.0, %v3029_v7  ;;  %v3163_v49 = vmul.f32 0.0, %v3034_v8  ;;  %v2445_v50 = vld [vmem:[%s3842_s3 + $0x15] ss:$0 sm:$0xff]  ;;  %v2448_v51 = vld [vmem:[%s3842_s3 + $0x2a] ss:$0 sm:$0xff] }
  0xb9   : > { %v870_v57 = vadd.f32 %v863_v55, %v848_v52  ;;  %v891_v58 = vadd.f32 %v883_v43, %v869_v54  ;;  %v2447_v43 = vld [vmem:[%s3842_s3 + $0x23] ss:$0 sm:$0xff]  ;;  %v949_v52 = vadd.f32 %v941_v30, %v926_v15 }
  0xba   : > { %v893_v59 = vadd.f32 %v887_v56, %v871_v53  ;;  %v963_v54 = vrot.slane %v957_v48, 6 }
  0xbb   : > { %v892_v63 = vadd.f32 %v885_v60, %v870_v57  ;;  %v3017_v0 = vadd.f32 %v2441_v28, %v891_v58  ;;  %v3182_v58 = vmul.f32 0.0, %v3042_v21 }
  0xbc   : > { %v3019_v6 = vadd.f32 %v2441_v28, %v893_v59 }
  0xbd   : > { %3865 = vst [vmem:[#allocation3_spill] sm:$0xff] %v3017_v0  ;;  %v3021_v13 = vadd.f32 %v2441_v28, %v892_v63  ;;  %v908_v39 = vrot.slane %v3017_v0, 6 }
  0xbe   : > { %3866 = vst [vmem:[#allocation4_spill] sm:$0xff] %v3019_v6  ;;  %v911_v2 = vrot.slane %v3019_v6, 6 }
  0xbf   : > { %3867 = vst [vmem:[#allocation5_spill] sm:$0xff] %v3021_v13  ;;  %v909_v3 = vrot.slane %v3021_v13, 6 }
  0xc1   : > { %v3045_v4 = vsel %vm907_vm4, %v908_v39, %v909_v3  ;;  %v3048_v17 = vsel %vm907_vm4, %v909_v3, %v911_v2  ;;  %v3185_v39 = vmul.f32 0.0, %v3076_v23  ;;  %v1021_v2 = vmul.f32 %v2447_v43, %v916_v38 }
  0xc2   : > { %919 = vrot.lane.b32.xlu0 %v3048_v17, %s2739_s28  ;;  %917 = vrot.lane.b32.xlu1 %v3045_v4, %s2739_s28  ;;  %v1355_v16 = vmul.f32 %v3029_v7, %v3048_v17  ;;  %v1377_v31 = vmul.f32 %v3034_v8, %v3048_v17  ;;  %v3060_v27 = vmul.f32 %v3029_v7, %v3045_v4  ;;  %s388_s28 = scalar_lea.vmem %s3850_s11, %s2530_s6 }
  0xc3   : > { %v3064_v32 = vmul.f32 %v3034_v8, %v3045_v4  ;;  %v3067_v14 = vmul.f32 %v2466_v9, %v3048_v17  ;;  %v3071_v29 = vmul.f32 %v3042_v21, %v3048_v17  ;;  %v3084_v18 = vmul.f32 %v2466_v9, %v3045_v4 }
  0xc4   : > { %v1362_v34 = vrot.slane %v1355_v16, 3  ;;  %v1384_v24 = vrot.slane %v1377_v31, 6  ;;  %v3858_v35 = vrot.slane %v3060_v27, 3  ;;  %v3088_v5 = vmul.f32 %v3042_v21, %v3045_v4 }
  0xc5   : > { %v3855_v19 = vrot.slane %v3064_v32, 6  ;;  %v3852_v42 = vrot.slane %v3067_v14, 1  ;;  %v3857_v36 = vrot.slane %v3071_v29, 4  ;;  %v3093_v26 = vmul.f32 %v3076_v23, %v3048_v17 }
  0xc6   : > { %1058 = vrot.lane.b32.xlu0 %v3045_v4, %s2740_s30  ;;  %1056 = vrot.lane.b32.xlu1 %v2734_v1, %s2740_s30  ;;  %v3098_v22 = vsel %vm461_vm2, %v3858_v35, %v1362_v34  ;;  %v3854_v12 = vrot.slane %v3084_v18, 1  ;;  %v3853_v61 = vrot.slane %v3088_v5, 4  ;;  %v3109_v40 = vmul.f32 %v3076_v23, %v3045_v4 }
  0xc7   : > { %v3103_v37 = vsel %vm907_vm4, %v3855_v19, %v1384_v24  ;;  %v3856_v25 = vrot.slane %v3093_v26, 7  ;;  %v3187_v3 = vmul.f32 %v2448_v51, %v916_v38  ;;  %v3190_v8 = vmul.f32 0.0, %v3171_v33 }
  0xc8   : > { %v3118_v41 = vsel %vm419_vm0, %v3854_v12, %v3852_v42  ;;  %v3126_v11 = vsel %vm484_vm3, %v3853_v61, %v3857_v36  ;;  %v3851_v10 = vrot.slane %v3109_v40, 7  ;;  %v971_v9 = vadd.f32 %v963_v54, %v949_v52 }
  0xca   : > { %1197 = vrot.lane.b32.xlu0 %v2734_v1, %s2741_s12  ;;  %1060 = vrot.lane.b32.xlu1 %v3048_v17, %s2740_s30  ;;  %v3136_v44 = vsel %vm1025_vm5, %v3851_v10, %v3856_v25 }
  0xce   : > { %1201 = vrot.lane.b32.xlu0 %v3048_v17, %s2741_s12  ;;  %1199 = vrot.lane.b32.xlu1 %v3045_v4, %s2741_s12 }
  0xd2   : > { %1475 = vrot.lane.b32.xlu0 %v3045_v4, %s2742_s13  ;;  %1473 = vrot.lane.b32.xlu1 %v2734_v1, %s2742_s13 }
  0xd6   : > { %1614 = vrot.lane.b32.xlu0 %v2734_v1, %s2743_s14  ;;  %1477 = vrot.lane.b32.xlu1 %v3048_v17, %s2742_s13 }
  0xda   : > { %1618 = vrot.lane.b32.xlu0 %v3048_v17, %s2743_s14  ;;  %1616 = vrot.lane.b32.xlu1 %v3045_v4, %s2743_s14 }
  0xde   : > { %1757 = vrot.lane.b32.xlu0 %v3045_v4, %s2744_s15  ;;  %1755 = vrot.lane.b32.xlu1 %v2734_v1, %s2744_s15  ;;  %v2446_v1 = vld [vmem:[%s3842_s3 + $0x1c] ss:$0 sm:$0xff] }
  0xdf   : > { %v999_v53 = vmul.f32 %v2446_v1, %v916_v38 }
  0xe1   : > { %v1006_v16 = vrot.slane %v999_v53, 4 }
  0xe2   : > { %1759 = vrot.lane.b32.xlu1 %v3048_v17, %s2744_s15 }
 0x134   : > { %v920_v28 = vpop.permute.xlu0 %919  ;;  %v918_v55 = vpop.permute.xlu1 %917 }
 0x135   : > { %v937_v59 = vmul.f32 %v2443_v20, %v920_v28  ;;  %v959_v60 = vmul.f32 %v2444_v47, %v920_v28  ;;  %v980_v63 = vmul.f32 %v2445_v50, %v920_v28  ;;  %v936_v7 = vmul.f32 %v2443_v20, %v918_v55 }
 0x136   : > { %v998_v34 = vmul.f32 %v2446_v1, %v920_v28  ;;  %v1020_v21 = vmul.f32 %v2447_v43, %v920_v28  ;;  %v958_v48 = vmul.f32 %v2444_v47, %v918_v55  ;;  %v927_v42 = vmul.f32 %v2442_v62, %v918_v55 }
 0x137   : > { %v944_v31 = vrot.slane %v937_v59, 3  ;;  %v966_v24 = vrot.slane %v959_v60, 6  ;;  %v942_v45 = vrot.slane %v936_v7, 3  ;;  %v984_v10 = vrot.slane %v980_v63, 1 }
 0x138   : > { %v979_v61 = vmul.f32 %v2445_v50, %v918_v55  ;;  %v997_v23 = vmul.f32 %v2446_v1, %v918_v55  ;;  %v964_v20 = vrot.slane %v958_v48, 6  ;;  %v1019_v57 = vmul.f32 %v2447_v43, %v918_v55  ;;  %v1059_v1 = vpop.permute.xlu0 %1058  ;;  %v2451_v55 = vld [vmem:[%s3842_s3 + $0xf] ss:$0 sm:$0xff] }
 0x139   : > { %v943_v12 = vsel %vm461_vm2, %v941_v30, %v942_v45  ;;  %v945_v38 = vsel %vm461_vm2, %v942_v45, %v944_v31  ;;  %v1042_v19 = vmul.f32 %v2448_v51, %v920_v28  ;;  %v1004_v59 = vrot.slane %v998_v34, 4  ;;  %v3199_v30 = vld [vmem:[%s3842_s3 + $0x8] ss:$0 sm:$0xff] }
 0x13a   : > { %v950_v25 = vadd.f32 %v943_v12, %v926_v15  ;;  %v951_v52 = vadd.f32 %v945_v38, %v927_v42  ;;  %v983_v53 = vrot.slane %v979_v61, 1  ;;  %v965_v60 = vsel %vm907_vm4, %v963_v54, %v964_v20 }
 0x13b   : > { %v967_v7 = vsel %vm907_vm4, %v964_v20, %v966_v24  ;;  %v1003_v47 = vrot.slane %v997_v23, 4  ;;  %v1029_v12 = vrot.slane %v1021_v2, 7  ;;  %v1027_v42 = vrot.slane %v1020_v21, 7  ;;  %v1057_v24 = vpop.permute.xlu1 %1056  ;;  %v2453_v23 = vld [vmem:[%s3842_s3 + $0x1d] ss:$0 sm:$0xff] }
 0x13c   : > { %v972_v63 = vadd.f32 %v965_v60, %v950_v25  ;;  %v973_v62 = vadd.f32 %v967_v7, %v951_v52  ;;  %v989_v50 = vadd.f32 %v983_v53, %v971_v9  ;;  %v985_v61 = vsel %vm419_vm0, %v983_v53, %v984_v10  ;;  %v2454_v52 = vld [vmem:[%s3842_s3 + $0x24] ss:$0 sm:$0xff] }
 0x13d   : > { %v1026_v15 = vrot.slane %v1019_v57, 7  ;;  %v1047_v51 = vrot.slane %v3187_v3, 2  ;;  %v1007_v9 = vsel %vm484_vm3, %v1004_v59, %v1006_v16  ;;  %v1046_v31 = vrot.slane %v1042_v19, 2  ;;  %v2452_v3 = vld [vmem:[%s3842_s3 + $0x16] ss:$0 sm:$0xff] }
 0x13e   : > { %v990_v54 = vadd.f32 %v985_v61, %v972_v63  ;;  %v991_v28 = vadd.f32 %v984_v10, %v973_v62  ;;  %v1011_v25 = vadd.f32 %v1003_v47, %v989_v50  ;;  %v1005_v34 = vsel %vm484_vm3, %v1003_v47, %v1004_v59  ;;  %v2449_v10 = vld [vmem:[%s3842_s3 + $0x1] ss:$0 sm:$0xff]  ;;  %v2462_v16 = vld [vmem:[%s3842_s3 + $0x2c] ss:$0 sm:$0xff] }
 0x13f   : > { %v3210_v2 = vmul.f32 %v3199_v30, %v1059_v1  ;;  %v1030_v19 = vsel %vm1025_vm5, %v1027_v42, %v1029_v12  ;;  %v1028_v48 = vsel %vm1025_vm5, %v1026_v15, %v1027_v42  ;;  %v3224_v38 = vmul.f32 %v2451_v55, %v1059_v1 }
 0x140   : > { %v1012_v21 = vadd.f32 %v1005_v34, %v990_v54  ;;  %v1034_v57 = vadd.f32 %v1026_v15, %v1011_v25  ;;  %v1013_v45 = vadd.f32 %v1007_v9, %v991_v28  ;;  %v1067_v20 = vmul.f32 %v2449_v10, %v1057_v24 }
 0x141   : > { %v1077_v7 = vmul.f32 %v3199_v30, %v1057_v24  ;;  %v1084_v47 = vrot.slane %v3210_v2, 3  ;;  %v1121_v63 = vmul.f32 %v2452_v3, %v1059_v1  ;;  %v1048_v62 = vsel %vm440_vm1, %v1046_v31, %v1047_v51  ;;  %v2455_v2 = vld [vmem:[%s3842_s3 + $0x2b] ss:$0 sm:$0xff] }
 0x142   : > { %v1036_v53 = vadd.f32 %v1030_v19, %v1013_v45  ;;  %v1035_v59 = vadd.f32 %v1028_v48, %v1012_v21  ;;  %v1053_v60 = vadd.f32 %v1046_v31, %v1034_v57  ;;  %v1099_v50 = vmul.f32 %v2451_v55, %v1057_v24  ;;  %v1061_v45 = vpop.permute.xlu1 %1060 }
 0x143   : > { %v3232_v12 = vmul.f32 %v2453_v23, %v1059_v1  ;;  %v1083_v15 = vrot.slane %v1077_v7, 3  ;;  %v1106_v54 = vrot.slane %v3224_v38, 6  ;;  %v3235_v28 = vmul.f32 %v2454_v52, %v1059_v1 }
 0x144   : > { %v1054_v42 = vadd.f32 %v1048_v62, %v1035_v59  ;;  %v1069_v61 = vadd.f32 %v1067_v20, %v1053_v60  ;;  %v3237_v25 = vmul.f32 %v2453_v23, %v1057_v24  ;;  %v3239_v9 = vmul.f32 %v2454_v52, %v1057_v24 }
 0x145   : > { %v1055_v34 = vadd.f32 %v1047_v51, %v1036_v53  ;;  %v1105_v57 = vrot.slane %v1099_v50, 6  ;;  %v1068_v19 = vmul.f32 %v2449_v10, %v1059_v1  ;;  %v1085_v48 = vsel %vm461_vm2, %v1083_v15, %v1084_v47  ;;  %v1198_v1 = vpop.permute.xlu0 %1197 }
 0x146   : > { %v1070_v31 = vadd.f32 %v1067_v20, %v1054_v42  ;;  %v1091_v21 = vadd.f32 %v1083_v15, %v1069_v61  ;;  %v3248_v59 = vmul.f32 %v3171_v33, %v3048_v17  ;;  %v1125_v60 = vrot.slane %v1121_v63, 1  ;;  %v2457_v63 = vld [vmem:[%s3842_s3 + $0x9] ss:$0 sm:$0xff] }
 0x147   : > { %v1145_v51 = vrot.slane %v3232_v12, 4  ;;  %v1167_v62 = vrot.slane %v3235_v28, 7  ;;  %v1148_v20 = vrot.slane %v3237_v25, 4  ;;  %v3253_v50 = vmul.f32 %v2455_v2, %v1057_v24  ;;  %v2456_v24 = vld [vmem:[%s3842_s3 + $0x2] ss:$0 sm:$0xff] }
 0x148   : > { %v1092_v53 = vadd.f32 %v1085_v48, %v1070_v31  ;;  %v1113_v7 = vadd.f32 %v1105_v57, %v1091_v21  ;;  %v1079_v10 = vmul.f32 %v3199_v30, %v1061_v45  ;;  %v1071_v42 = vadd.f32 %v1068_v19, %v1055_v34 }
 0x149   : > { %v1107_v61 = vsel %vm907_vm4, %v1105_v57, %v1106_v54  ;;  %v1170_v17 = vrot.slane %v3239_v9, 7  ;;  %v1101_v28 = vmul.f32 %v2451_v55, %v1061_v45  ;;  %v1122_v31 = vmul.f32 %v2452_v3, %v1061_v45  ;;  %v2458_v9 = vld [vmem:[%s3842_s3 + $0x10] ss:$0 sm:$0xff]  ;;  %v2460_v55 = vld [vmem:[%s3842_s3 + $0x1e] ss:$0 sm:$0xff] }
 0x14a   : > { %v1131_v15 = vadd.f32 %v1125_v60, %v1113_v7  ;;  %v1114_v33 = vadd.f32 %v1107_v61, %v1092_v53  ;;  %v1086_v12 = vrot.slane %v1079_v10, 3  ;;  %v1140_v30 = vmul.f32 %v2453_v23, %v1061_v45  ;;  %v2461_v3 = vld [vmem:[%s3842_s3 + $0x25] ss:$0 sm:$0xff] }
 0x14b   : > { %v1162_v34 = vmul.f32 %v2454_v52, %v1061_v45  ;;  %v1183_v21 = vmul.f32 %v2455_v2, %v1061_v45  ;;  %v1208_v57 = vmul.f32 %v2456_v24, %v1198_v1  ;;  %v1108_v48 = vrot.slane %v1101_v28, 6 }
 0x14c   : > { %v1153_v25 = vadd.f32 %v1145_v51, %v1131_v15  ;;  %v1087_v19 = vsel %vm461_vm2, %v1084_v47, %v1086_v12  ;;  %v1126_v53 = vrot.slane %v1122_v31, 1  ;;  %v1218_v23 = vmul.f32 %v2457_v63, %v1198_v1  ;;  %v1202_v15 = vpop.permute.xlu0 %1201 }
 0x14d   : > { %v1093_v2 = vadd.f32 %v1087_v19, %v1071_v42  ;;  %v1146_v45 = vrot.slane %v1140_v30, 4  ;;  %v1109_v7 = vsel %vm907_vm4, %v1106_v54, %v1108_v48  ;;  %v1168_v61 = vrot.slane %v1162_v34, 7 }
 0x14e   : > { %v1175_v52 = vadd.f32 %v1167_v62, %v1153_v25  ;;  %v1127_v10 = vsel %vm419_vm0, %v1125_v60, %v1126_v53  ;;  %v1187_v47 = vrot.slane %v1183_v21, 2  ;;  %v1188_v12 = vrot.slane %v3253_v50, 2  ;;  %v2459_v50 = vld [vmem:[%s3842_s3 + $0x17] ss:$0 sm:$0xff] }
 0x14f   : > { %v1240_v28 = vmul.f32 %v2458_v9, %v1198_v1  ;;  %v1115_v31 = vadd.f32 %v1109_v7, %v1093_v2  ;;  %v1132_v38 = vadd.f32 %v1127_v10, %v1114_v33  ;;  %v3280_v36 = vmul.f32 %v2460_v55, %v1198_v1  ;;  %v1200_v7 = vpop.permute.xlu1 %1199 }
 0x150   : > { %v3282_v42 = vmul.f32 %v2461_v3, %v1198_v1  ;;  %v1147_v54 = vsel %vm484_vm3, %v1145_v51, %v1146_v45  ;;  %v1194_v25 = vadd.f32 %v1187_v47, %v1175_v52  ;;  %v1224_v60 = vrot.slane %v1218_v23, 3 }
 0x151   : > { %v1133_v30 = vadd.f32 %v1126_v53, %v1115_v31  ;;  %v1154_v34 = vadd.f32 %v1147_v54, %v1132_v38  ;;  %v1220_v21 = vmul.f32 %v2457_v63, %v1202_v15  ;;  %v1149_v33 = vsel %vm484_vm3, %v1146_v45, %v1148_v20 }
 0x152   : > { %v1169_v19 = vsel %vm1025_vm5, %v1167_v62, %v1168_v61  ;;  %v1210_v48 = vadd.f32 %v1208_v57, %v1194_v25  ;;  %v1242_v2 = vmul.f32 %v2458_v9, %v1202_v15  ;;  %v1246_v10 = vrot.slane %v1240_v28, 6 }
 0x153   : > { %v3290_v43 = vmul.f32 %v2462_v16, %v1198_v1  ;;  %v1155_v51 = vadd.f32 %v1149_v33, %v1133_v30  ;;  %v1176_v52 = vadd.f32 %v1169_v19, %v1154_v34  ;;  %v1171_v53 = vsel %vm1025_vm5, %v1168_v61, %v1170_v17 }
 0x154   : > { %v1189_v38 = vsel %vm440_vm1, %v1187_v47, %v1188_v12  ;;  %v1263_v23 = vmul.f32 %v2459_v50, %v1202_v15  ;;  %v1232_v31 = vadd.f32 %v1224_v60, %v1210_v48  ;;  %v1227_v56 = vrot.slane %v1220_v21, 3 }
 0x155   : > { %v1195_v54 = vadd.f32 %v1189_v38, %v1176_v52  ;;  %v1177_v35 = vadd.f32 %v1171_v53, %v1155_v51  ;;  %v1219_v20 = vmul.f32 %v2457_v63, %v1200_v7  ;;  %v1249_v45 = vrot.slane %v1242_v2, 6 }
 0x156   : > { %v1281_v62 = vmul.f32 %v2460_v55, %v1202_v15  ;;  %v1303_v25 = vmul.f32 %v2461_v3, %v1202_v15  ;;  %v1209_v13 = vmul.f32 %v2456_v24, %v1200_v7  ;;  %v1241_v0 = vmul.f32 %v2458_v9, %v1200_v7 }
 0x157   : > { %v1196_v6 = vadd.f32 %v1188_v12, %v1177_v35  ;;  %v1211_v28 = vadd.f32 %v1208_v57, %v1195_v54  ;;  %v1225_v1 = vrot.slane %v1219_v20, 3  ;;  %v1267_v30 = vrot.slane %v1263_v23, 1  ;;  %v3310_v23 = vld [vmem:[%s3842_s3 + $0xb] ss:$0 sm:$0xff] }
 0x158   : > { %v1254_v34 = vadd.f32 %v1246_v10, %v1232_v31  ;;  %v1262_v33 = vmul.f32 %v2459_v50, %v1200_v7  ;;  %v1280_v17 = vmul.f32 %v2460_v55, %v1200_v7  ;;  %v1247_v19 = vrot.slane %v1241_v0, 6 }
 0x159   : > { %v1212_v61 = vadd.f32 %v1209_v13, %v1196_v6  ;;  %v1226_v47 = vsel %vm461_vm2, %v1224_v60, %v1225_v1  ;;  %v1302_v48 = vmul.f32 %v2461_v3, %v1200_v7  ;;  %v1324_v21 = vmul.f32 %v2462_v16, %v1202_v15  ;;  %v2463_v3 = vld [vmem:[%s3842_s3 + $0x3] ss:$0 sm:$0xff] }
 0x15a   : > { %v1228_v63 = vsel %vm461_vm2, %v1225_v1, %v1227_v56  ;;  %v1233_v2 = vadd.f32 %v1226_v47, %v1211_v28  ;;  %v1266_v51 = vrot.slane %v1262_v33, 1  ;;  %v1287_v52 = vrot.slane %v1281_v62, 4  ;;  %v3316_v62 = vld [vmem:[%s3842_s3 + $0x12] ss:$0 sm:$0xff] }
 0x15b   : > { %v1234_v24 = vadd.f32 %v1228_v63, %v1212_v61  ;;  %v1248_v35 = vsel %vm907_vm4, %v1246_v10, %v1247_v19  ;;  %v1286_v57 = vrot.slane %v1280_v17, 4  ;;  %v1289_v9 = vrot.slane %v3280_v36, 4 }
 0x15c   : > { %v1250_v12 = vsel %vm907_vm4, %v1247_v19, %v1249_v45  ;;  %v1255_v55 = vadd.f32 %v1248_v35, %v1233_v2  ;;  %v1272_v6 = vadd.f32 %v1266_v51, %v1254_v34  ;;  %v1309_v13 = vrot.slane %v1303_v25, 7  ;;  %v1474_v19 = vpop.permute.xlu1 %1473  ;;  %v2473_v2 = vld [vmem:[%s3842_s3 + $0x19] ss:$0 sm:$0xff] }
 0x15d   : > { %v1256_v60 = vadd.f32 %v1250_v12, %v1234_v24  ;;  %v1268_v0 = vsel %vm419_vm0, %v1266_v51, %v1267_v30  ;;  %v1308_v16 = vrot.slane %v1302_v48, 7  ;;  %v1311_v56 = vrot.slane %v3282_v42, 7  ;;  %v1476_v42 = vpop.permute.xlu0 %1475 }
 0x15e   : > { %v1273_v15 = vadd.f32 %v1268_v0, %v1255_v55  ;;  %v1294_v50 = vadd.f32 %v1286_v57, %v1272_v6  ;;  %v1463_v7 = vrot.slane %v3248_v59, 2  ;;  %v1329_v36 = vrot.slane %v3290_v43, 2 }
 0x15f   : > { %v1328_v10 = vrot.slane %v1324_v21, 2  ;;  %v1274_v53 = vadd.f32 %v1267_v30, %v1256_v60  ;;  %v1288_v38 = vsel %vm484_vm3, %v1286_v57, %v1287_v52  ;;  %v1290_v31 = vsel %vm484_vm3, %v1287_v52, %v1289_v9 }
 0x160   : > { %v1343_v54 = vmul.f32 0.0, %v2463_v3  ;;  %v1295_v20 = vadd.f32 %v1288_v38, %v1273_v15  ;;  %v1316_v45 = vadd.f32 %v1308_v16, %v1294_v50  ;;  %v1310_v25 = vsel %vm1025_vm5, %v1308_v16, %v1309_v13 }
 0x161   : > { %v1296_v43 = vadd.f32 %v1290_v31, %v1274_v53  ;;  %v1344_v28 = vmul.f32 %v2463_v3, %v3045_v4  ;;  %v3868_v1 = vrot.slane %v3060_v27, 3  ;;  %v3869_v30 = vrot.slane %v3160_v46, 3 }
 0x162   : > { %v1312_v33 = vsel %vm1025_vm5, %v1309_v13, %v1311_v56  ;;  %v1317_v17 = vadd.f32 %v1310_v25, %v1295_v20  ;;  %v1335_v61 = vadd.f32 %v1328_v10, %v1316_v45  ;;  %v3327_v47 = vmul.f32 %v3310_v23, %v1476_v42 }
 0x163   : > { %v1361_v34 = vsel %vm461_vm2, %v3869_v30, %v3868_v1  ;;  %v1330_v48 = vsel %vm440_vm1, %v1328_v10, %v1329_v36  ;;  %v1318_v21 = vadd.f32 %v1312_v33, %v1296_v43  ;;  %v3870_v63 = vrot.slane %v3182_v58, 4  ;;  %v3354_v58 = vld [vmem:[%s3842_s3 + $0x27] ss:$0 sm:$0xff]  ;;  %v2470_v10 = vld [vmem:[%s3842_s3 + $0x4] ss:$0 sm:$0xff] }
 0x164   : > { %v3871_v4 = vrot.slane %v3071_v29, 4  ;;  %v3339_v51 = vmul.f32 %v3316_v62, %v1476_v42  ;;  %v1336_v52 = vadd.f32 %v1330_v48, %v1317_v17  ;;  %v1345_v24 = vadd.f32 %v1343_v54, %v1335_v61  ;;  %v3349_v29 = vld [vmem:[%s3842_s3 + $0x20] ss:$0 sm:$0xff] }
 0x165   : > { %v3872_v35 = vrot.slane %v3185_v39, 7  ;;  %v3873_v57 = vrot.slane %v3093_v26, 7  ;;  %v3874_v12 = vrot.slane %v3190_v8, 2  ;;  %v1337_v26 = vadd.f32 %v1329_v36, %v1318_v21 }
 0x166   : > { %v1425_v27 = vsel %vm484_vm3, %v3871_v4, %v3870_v63  ;;  %v3875_v55 = vrot.slane %v3064_v32, 6  ;;  %v3876_v6 = vrot.slane %v3163_v49, 6  ;;  %v3369_v60 = vmul.f32 %v3310_v23, %v1474_v19  ;;  %v3382_v32 = vld [vmem:[%s3842_s3 + $0x2e] ss:$0 sm:$0xff]  ;;  %v1478_v4 = vpop.permute.xlu1 %1477 }
 0x167   : > { %v1447_v9 = vsel %vm1025_vm5, %v3873_v57, %v3872_v35  ;;  %v3361_v39 = vsel %vm440_vm1, %v1463_v7, %v3874_v12  ;;  %v3372_v0 = vmul.f32 %v3316_v62, %v1474_v19  ;;  %v1346_v16 = vadd.f32 %v1343_v54, %v1336_v52 }
 0x168   : > { %v1383_v13 = vsel %vm907_vm4, %v3876_v6, %v3875_v55  ;;  %v3877_v56 = vmov %v3869_v30  ;;  %v1501_v15 = vrot.slane %v3327_v47, 3  ;;  %v3377_v50 = vmul.f32 %v2473_v2, %v1476_v42  ;;  %v3441_v55 = vld [vmem:[%s3842_s3 + $0x13] ss:$0 sm:$0xff] }
 0x169   : > { %v1367_v3 = vadd.f32 %v3877_v56, %v1345_v24  ;;  %v1347_v36 = vadd.f32 %v1344_v28, %v1337_v26  ;;  %v1523_v53 = vrot.slane %v3339_v51, 6  ;;  %v3389_v38 = vmul.f32 %v3349_v29, %v1476_v42  ;;  %v3459_v56 = vld [vmem:[%s3842_s3 + $0x2f] ss:$0 sm:$0xff] }
 0x16a   : > { %v3392_v46 = vmul.f32 %v3354_v58, %v1476_v42  ;;  %v1368_v31 = vadd.f32 %v1361_v34, %v1346_v16  ;;  %v3878_v54 = vmov %v3876_v6  ;;  %v3397_v45 = vmul.f32 %v3349_v29, %v1474_v19  ;;  %v1615_v6 = vpop.permute.xlu0 %1614  ;;  %v3454_v16 = vld [vmem:[%s3842_s3 + $0x28] ss:$0 sm:$0xff] }
 0x16b   : > { %v1389_v20 = vadd.f32 %v3878_v54, %v1367_v3  ;;  %v3400_v43 = vmul.f32 %v3354_v58, %v1474_v19  ;;  %v1369_v25 = vadd.f32 %v3098_v22, %v1347_v36  ;;  %v1500_v28 = vrot.slane %v3369_v60, 3 }
 0x16c   : > { %v1522_v1 = vrot.slane %v3372_v0, 6  ;;  %v3406_v30 = vmul.f32 %v3382_v32, %v1474_v19  ;;  %v1485_v33 = vmul.f32 %v2470_v10, %v1476_v42  ;;  %v1390_v34 = vadd.f32 %v1383_v13, %v1368_v31 }
 0x16d   : > { %v3879_v49 = vrot.slane %v3084_v18, 1  ;;  %v1484_v61 = vmul.f32 %v2470_v10, %v1474_v19  ;;  %v1391_v48 = vadd.f32 %v3103_v37, %v1369_v25  ;;  %v1542_v21 = vrot.slane %v3377_v50, 1  ;;  %v3422_v37 = vld [vmem:[%s3842_s3 + $0x5] ss:$0 sm:$0xff]  ;;  %v3427_v19 = vld [vmem:[%s3842_s3 + $0xc] ss:$0 sm:$0xff] }
 0x16e   : > { %v1562_v63 = vrot.slane %v3389_v38, 4  ;;  %v1584_v22 = vrot.slane %v3392_v46, 7  ;;  %v1408_v52 = vadd.f32 %v3118_v41, %v1390_v34  ;;  %v3880_v24 = vrot.slane %v3088_v5, 4 }
 0x16f   : > { %v1407_v17 = vadd.f32 %v3879_v49, %v1389_v20  ;;  %v1565_v42 = vrot.slane %v3397_v45, 4  ;;  %v1587_v18 = vrot.slane %v3400_v43, 7  ;;  %v3881_v57 = vrot.slane %v3067_v14, 1  ;;  %v3446_v14 = vld [vmem:[%s3842_s3 + $0x21] ss:$0 sm:$0xff] }
 0x170   : > { %v1502_v5 = vsel %vm461_vm2, %v1500_v28, %v1501_v15  ;;  %v1524_v12 = vsel %vm907_vm4, %v1522_v1, %v1523_v53  ;;  %v1605_v26 = vrot.slane %v3406_v30, 2  ;;  %v1430_v13 = vadd.f32 %v3126_v11, %v1408_v52 }
 0x171   : > { %v1429_v35 = vadd.f32 %v3880_v24, %v1407_v17  ;;  %v1409_v41 = vadd.f32 %v3881_v57, %v1391_v48  ;;  %v3882_v60 = vrot.slane %v3109_v40, 7  ;;  %v3462_v3 = vmul.f32 %v3422_v37, %v1615_v6 }
 0x172   : > { %v1496_v50 = vmul.f32 %v3310_v23, %v1478_v4  ;;  %v3466_v11 = vmul.f32 %v3427_v19, %v1615_v6  ;;  %v1518_v40 = vmul.f32 %v3316_v62, %v1478_v4  ;;  %v1539_v10 = vmul.f32 %v2473_v2, %v1478_v4 }
 0x173   : > { %v1451_v0 = vadd.f32 %v3882_v60, %v1429_v35  ;;  %v1431_v36 = vadd.f32 %v1425_v27, %v1409_v41  ;;  %v1452_v31 = vadd.f32 %v3136_v44, %v1430_v13  ;;  %v3473_v20 = vmul.f32 %v3441_v55, %v1615_v6 }
 0x174   : > { %v3476_v25 = vmul.f32 %v3446_v14, %v1615_v6  ;;  %v3479_v23 = vmul.f32 %v3454_v16, %v1615_v6  ;;  %v3482_v27 = vmul.f32 %v3459_v56, %v1615_v6  ;;  %v1557_v62 = vmul.f32 %v3349_v29, %v1478_v4 }
 0x175   : > { %v1470_v54 = vadd.f32 %v1463_v7, %v1451_v0  ;;  %v1453_v34 = vadd.f32 %v1447_v9, %v1431_v36  ;;  %v1471_v44 = vadd.f32 %v3361_v39, %v1452_v31  ;;  %v1503_v59 = vrot.slane %v1496_v50, 3 }
 0x176   : > { %v1579_v7 = vmul.f32 %v3354_v58, %v1478_v4  ;;  %v3883_v49 = vrot.slane %v3190_v8, 2  ;;  %v1641_v48 = vrot.slane %v3466_v11, 3  ;;  %v1525_v9 = vrot.slane %v1518_v40, 6  ;;  %v1619_v58 = vpop.permute.xlu0 %1618  ;;  %v2487_v11 = vld [vmem:[%s3842_s3 + $0x1b] ss:$0 sm:$0xff] }
 0x177   : > { %v1486_v2 = vadd.f32 %v1484_v61, %v1470_v54  ;;  %v1543_v52 = vrot.slane %v1539_v10, 1  ;;  %v1487_v24 = vadd.f32 %v1484_v61, %v1471_v44  ;;  %v1663_v57 = vrot.slane %v3473_v20, 6  ;;  %v1617_v10 = vpop.permute.xlu1 %1616 }
 0x178   : > { %v1472_v17 = vadd.f32 %v3883_v49, %v1453_v34  ;;  %v1706_v41 = vrot.slane %v3476_v25, 4  ;;  %v1728_v39 = vrot.slane %v3479_v23, 7  ;;  %v1746_v6 = vrot.slane %v3482_v27, 2 }
 0x179   : > { %v1508_v35 = vadd.f32 %v1500_v28, %v1486_v2  ;;  %v1563_v13 = vrot.slane %v1557_v62, 4  ;;  %v1509_v60 = vadd.f32 %v1502_v5, %v1487_v24  ;;  %v1504_v0 = vsel %vm461_vm2, %v1501_v15, %v1503_v59  ;;  %v2480_v28 = vld [vmem:[%s3842_s3 + $0x1a] ss:$0 sm:$0xff] }
 0x17a   : > { %v1488_v29 = vadd.f32 %v1485_v33, %v1472_v17  ;;  %v1585_v50 = vrot.slane %v1579_v7, 7  ;;  %v1526_v33 = vsel %vm907_vm4, %v1523_v53, %v1525_v9  ;;  %v1544_v36 = vsel %vm419_vm0, %v1542_v21, %v1543_v52 }
 0x17b   : > { %v1530_v8 = vadd.f32 %v1522_v1, %v1508_v35  ;;  %v1600_v40 = vmul.f32 %v3382_v32, %v1478_v4  ;;  %v1531_v5 = vadd.f32 %v1524_v12, %v1509_v60  ;;  %v1637_v47 = vmul.f32 %v3427_v19, %v1619_v58 }
 0x17c   : > { %v1510_v61 = vadd.f32 %v1504_v0, %v1488_v29  ;;  %v1659_v15 = vmul.f32 %v3441_v55, %v1619_v58  ;;  %v1564_v54 = vsel %vm484_vm3, %v1562_v63, %v1563_v13  ;;  %v1566_v51 = vsel %vm484_vm3, %v1563_v13, %v1565_v42 }
 0x17d   : > { %v1548_v1 = vadd.f32 %v1542_v21, %v1530_v8  ;;  %v3513_v53 = vmul.f32 %v2480_v28, %v1619_v58  ;;  %v1549_v25 = vadd.f32 %v1544_v36, %v1531_v5  ;;  %v1586_v21 = vsel %vm1025_vm5, %v1584_v22, %v1585_v50  ;;  %v2484_v36 = vld [vmem:[%s3842_s3 + $0x6] ss:$0 sm:$0xff]  ;;  %v2486_v5 = vld [vmem:[%s3842_s3 + $0x14] ss:$0 sm:$0xff] }
 0x17e   : > { %v1532_v31 = vadd.f32 %v1526_v33, %v1510_v61  ;;  %v3521_v4 = vmul.f32 %v3446_v14, %v1619_v58  ;;  %v1588_v45 = vsel %vm1025_vm5, %v1585_v50, %v1587_v18  ;;  %v1604_v34 = vrot.slane %v1600_v40, 2  ;;  %v3548_v50 = vpop.permute.xlu1 %1755 }
 0x17f   : > { %v1570_v32 = vadd.f32 %v1562_v63, %v1548_v1  ;;  %v1636_v42 = vmul.f32 %v3427_v19, %v1617_v10  ;;  %v1571_v62 = vadd.f32 %v1564_v54, %v1549_v25  ;;  %v1644_v63 = vrot.slane %v1637_v47, 3  ;;  %v2488_v25 = vld [vmem:[%s3842_s3 + $0x22] ss:$0 sm:$0xff] }
 0x180   : > { %v1550_v12 = vadd.f32 %v1543_v52, %v1532_v31  ;;  %v1666_v44 = vrot.slane %v1659_v15, 6  ;;  %v1684_v59 = vrot.slane %v3513_v53, 1  ;;  %v1720_v7 = vmul.f32 %v3454_v16, %v1619_v58 }
 0x181   : > { %v1592_v38 = vadd.f32 %v1584_v22, %v1570_v32  ;;  %v1658_v49 = vmul.f32 %v3441_v55, %v1617_v10  ;;  %v1593_v17 = vadd.f32 %v1586_v21, %v1571_v62  ;;  %v1704_v18 = vrot.slane %v3521_v4, 4  ;;  %v2489_v62 = vld [vmem:[%s3842_s3 + $0x29] ss:$0 sm:$0xff] }
 0x182   : > { %v1572_v2 = vadd.f32 %v1566_v51, %v1550_v12  ;;  %v1679_v9 = vmul.f32 %v2480_v28, %v1617_v10  ;;  %v1606_v19 = vsel %vm440_vm1, %v1604_v34, %v1605_v26  ;;  %v3537_v46 = vmul.f32 %v3459_v56, %v1619_v58  ;;  %v2485_v56 = vld [vmem:[%s3842_s3 + $0xd] ss:$0 sm:$0xff]  ;;  %v1758_v58 = vpop.permute.xlu0 %1757  ;;  %v1760_v4 = vpop.permute.xlu1 %1759 }
 0x183   : > { %v1611_v43 = vadd.f32 %v1604_v34, %v1592_v38  ;;  %v1642_v52 = vrot.slane %v1636_v42, 3  ;;  %v1612_v24 = vadd.f32 %v1606_v19, %v1593_v17  ;;  %v1626_v29 = vmul.f32 %v3422_v37, %v1617_v10 }
 0x184   : > { %v1594_v22 = vadd.f32 %v1588_v45, %v1572_v2  ;;  %v1697_v55 = vmul.f32 %v3446_v14, %v1617_v10  ;;  %v1726_v13 = vrot.slane %v1720_v7, 7  ;;  %v1664_v8 = vrot.slane %v1658_v49, 6 }
 0x185   : > { %v1627_v35 = vadd.f32 %v3462_v3, %v1611_v43  ;;  %v1719_v0 = vmul.f32 %v3454_v16, %v1617_v10  ;;  %v1707_v28 = vsel %vm484_vm3, %v1704_v18, %v1706_v41  ;;  %v1628_v37 = vadd.f32 %v3462_v3, %v1612_v24 }
 0x186   : > { %v1613_v60 = vadd.f32 %v1605_v26, %v1594_v22  ;;  %v1683_v61 = vrot.slane %v1679_v9, 1  ;;  %v1745_v30 = vrot.slane %v3537_v46, 2  ;;  %v1643_v16 = vsel %vm461_vm2, %v1641_v48, %v1642_v52 }
 0x187   : > { %v1649_v14 = vadd.f32 %v1641_v48, %v1627_v35  ;;  %v1645_v33 = vsel %vm461_vm2, %v1642_v52, %v1644_v63  ;;  %v1650_v41 = vadd.f32 %v1643_v16, %v1628_v37  ;;  %v1703_v40 = vrot.slane %v1697_v55, 4 }
 0x188   : > { %v1629_v26 = vadd.f32 %v1626_v29, %v1613_v60  ;;  %v1777_v48 = vmul.f32 %v2485_v56, %v1758_v58  ;;  %v1729_v1 = vsel %vm1025_vm5, %v1726_v13, %v1728_v39  ;;  %v1665_v15 = vsel %vm907_vm4, %v1663_v57, %v1664_v8 }
 0x189   : > { %v1671_v3 = vadd.f32 %v1663_v57, %v1649_v14  ;;  %v1725_v10 = vrot.slane %v1719_v0, 7  ;;  %v1667_v31 = vsel %vm907_vm4, %v1664_v8, %v1666_v44  ;;  %v1672_v54 = vadd.f32 %v1665_v15, %v1650_v41 }
 0x18a   : > { %v1651_v47 = vadd.f32 %v1645_v33, %v1629_v26  ;;  %v1685_v51 = vsel %vm419_vm0, %v1683_v61, %v1684_v59  ;;  %v1767_v23 = vmul.f32 %v2484_v36, %v1758_v58  ;;  %v1799_v21 = vmul.f32 %v2486_v5, %v1758_v58 }
 0x18b   : > { %v1689_v53 = vadd.f32 %v1683_v61, %v1671_v3  ;;  %v1820_v39 = vmul.f32 %v2487_v11, %v1758_v58  ;;  %v1690_v12 = vadd.f32 %v1685_v51, %v1672_v54  ;;  %v1705_v20 = vsel %vm484_vm3, %v1703_v40, %v1704_v18 }
 0x18c   : > { %v1673_v32 = vadd.f32 %v1667_v31, %v1651_v47  ;;  %v1783_v45 = vrot.slane %v1777_v48, 3  ;;  %v1727_v42 = vsel %vm1025_vm5, %v1725_v10, %v1726_v13  ;;  %v1838_v38 = vmul.f32 %v2488_v25, %v1758_v58 }
 0x18d   : > { %v1711_v57 = vadd.f32 %v1703_v40, %v1689_v53  ;;  %v1776_v63 = vmul.f32 %v2485_v56, %v3548_v50  ;;  %v1712_v44 = vadd.f32 %v1705_v20, %v1690_v12  ;;  %v1766_v7 = vmul.f32 %v2484_v36, %v3548_v50 }
 0x18e   : > { %v1691_v34 = vadd.f32 %v1684_v59, %v1673_v32  ;;  %v1778_v49 = vmul.f32 %v2485_v56, %v1760_v4  ;;  %v1805_v43 = vrot.slane %v1799_v21, 6  ;;  %v1824_v18 = vrot.slane %v1820_v39, 1  ;;  %v2490_v56 = vld [vmem:[%s3842_s3 + $0x30] ss:$0 sm:$0xff] }
 0x18f   : > { %v1733_v2 = vadd.f32 %v1725_v10, %v1711_v57  ;;  %v1798_v9 = vmul.f32 %v2486_v5, %v3548_v50  ;;  %v1860_v59 = vmul.f32 %v2489_v62, %v1758_v58  ;;  %v1734_v19 = vadd.f32 %v1727_v42, %v1712_v44 }
 0x190   : > { %v1713_v17 = vadd.f32 %v1707_v28, %v1691_v34  ;;  %v1800_v22 = vmul.f32 %v2486_v5, %v1760_v4  ;;  %v1747_v24 = vsel %vm440_vm1, %v1745_v30, %v1746_v6  ;;  %v1782_v35 = vrot.slane %v1776_v63, 3 }
 0x191   : > { %v1752_v46 = vadd.f32 %v1745_v30, %v1733_v2  ;;  %v1821_v29 = vmul.f32 %v2487_v11, %v1760_v4  ;;  %v1844_v55 = vrot.slane %v1838_v38, 4  ;;  %v1753_v13 = vadd.f32 %v1747_v24, %v1734_v19  ;;  %v2494_v2 = vld [vmem:[%s3844_s5 + $0x2] ss:$0 sm:$0xff] }
 0x192   : > { %v1735_v52 = vadd.f32 %v1729_v1, %v1713_v17  ;;  %v1785_v8 = vrot.slane %v1778_v49, 3  ;;  %v1804_v58 = vrot.slane %v1798_v9, 6  ;;  %v1840_v28 = vmul.f32 %v2488_v25, %v3548_v50  ;;  %v2493_v17 = vld [vmem:[%s3844_s5 + $0x1] ss:$0 sm:$0xff] }
 0x193   : > { %v1768_v60 = vadd.f32 %v1766_v7, %v1752_v46  ;;  %v1839_v37 = vmul.f32 %v2488_v25, %v1760_v4  ;;  %v1769_v14 = vadd.f32 %v1766_v7, %v1753_v13  ;;  %v1862_v30 = vmul.f32 %v2489_v62, %v3548_v50  ;;  %v3626_v46 = vld [vmem:[%s2826_s24 + $0x8] sm:$0xff] }
 0x194   : > { %v1754_v0 = vadd.f32 %v1746_v6, %v1735_v52  ;;  %v1807_v26 = vrot.slane %v1800_v22, 6  ;;  %v1784_v33 = vsel %vm461_vm2, %v1782_v35, %v1783_v45  ;;  %v1825_v36 = vrot.slane %v1821_v29, 1  ;;  %v2492_v29 = vld [vmem:[%s3844_s5] ss:$0 sm:$0xff] }
 0x195   : > { %v1790_v61 = vadd.f32 %v1782_v35, %v1768_v60  ;;  %v1861_v41 = vmul.f32 %v2489_v62, %v1760_v4  ;;  %v1791_v27 = vadd.f32 %v1784_v33, %v1769_v14  ;;  %v1883_v3 = vmul.f32 %v2490_v56, %v3548_v50  ;;  %v2491_v62 = vld [vmem:[%s3843_s4] ss:$0 sm:$0xff]  ;;  %v3885_v14 = vld [vmem:[#allocation4_spill] sm:$0xff] }
 0x196   : > { %v1770_v16 = vadd.f32 %v1767_v23, %v1754_v0  ;;  %v1786_v40 = vsel %vm461_vm2, %v1783_v45, %v1785_v8  ;;  %v1806_v5 = vsel %vm907_vm4, %v1804_v58, %v1805_v43  ;;  %v1845_v48 = vrot.slane %v1839_v37, 4 }
 0x197   : > { %v1812_v6 = vadd.f32 %v1804_v58, %v1790_v61  ;;  %v1882_v1 = vmul.f32 %v2490_v56, %v1760_v4  ;;  %v1813_v47 = vadd.f32 %v1806_v5, %v1791_v27  ;;  %v1847_v10 = vrot.slane %v1840_v28, 4  ;;  %v3884_v28 = vld [vmem:[#allocation3_spill] sm:$0xff] }
 0x198   : > { %v1792_v11 = vadd.f32 %v1786_v40, %v1770_v16  ;;  %v1808_v31 = vsel %vm907_vm4, %v1805_v43, %v1807_v26  ;;  %v1826_v51 = vsel %vm419_vm0, %v1824_v18, %v1825_v36  ;;  %v1867_v53 = vrot.slane %v1861_v41, 7 }
 0x199   : > { %v1830_v15 = vadd.f32 %v1824_v18, %v1812_v6  ;;  %v1866_v25 = vrot.slane %v1860_v59, 7  ;;  %v1869_v32 = vrot.slane %v1862_v30, 7  ;;  %v1831_v23 = vadd.f32 %v1826_v51, %v1813_v47  ;;  %v3622_v59 = vld [vmem:[%s2826_s24] sm:$0xff]  ;;  %v3886_v30 = vld [vmem:[#allocation5_spill] sm:$0xff] }
 0x19a   : > { %v1814_v54 = vadd.f32 %v1808_v31, %v1792_v11  ;;  %v1887_v21 = vrot.slane %v1883_v3, 2  ;;  %v1846_v12 = vsel %vm484_vm3, %v1844_v55, %v1845_v48  ;;  %v1886_v20 = vrot.slane %v1882_v1, 2 }
 0x19b   : > { %v1852_v50 = vadd.f32 %v1844_v55, %v1830_v15  ;;  %v1848_v4 = vsel %vm484_vm3, %v1845_v48, %v1847_v10  ;;  %v1853_v45 = vadd.f32 %v1846_v12, %v1831_v23  ;;  %v1868_v42 = vsel %vm1025_vm5, %v1866_v25, %v1867_v53 }
 0x19c   : > { %v1832_v39 = vadd.f32 %v1825_v36, %v1814_v54  ;;  %v1870_v63 = vsel %vm1025_vm5, %v1867_v53, %v1869_v32  ;;  %v1888_v49 = vsel %vm440_vm1, %v1886_v20, %v1887_v21  ;;  %v1941_v19 = vmul.f32 %v3622_v59, %v2494_v2 }
 0x19d   : > { %v1874_v57 = vadd.f32 %v1866_v25, %v1852_v50  ;;  %v1875_v44 = vadd.f32 %v1868_v42, %v1853_v45  ;;  %v1942_v22 = vmul.f32 %v3626_v46, %v2494_v2  ;;  %v1911_v37 = vmul.f32 %v2492_v29, %v3884_v28  ;;  %v2044_v42 = vld [vmem:[%s3848_s9 + $0x78] sm:$0xff]  ;;  %v2507_v2 = vld [vmem:[%s3848_s9 + $0xe0] sm:$0xff] }
 0x19e   : > { %v1854_v34 = vadd.f32 %v1848_v4, %v1832_v39  ;;  %v1945_v60 = vrot.slane %v1941_v19, 2  ;;  %v1913_v61 = vmul.f32 %v2492_v29, %v3885_v14  ;;  %v1912_v26 = vmul.f32 %v2492_v29, %v3886_v30  ;;  %2621 = vmatprep.subr.mxu1 %v2044_v42  ;;  %v2504_v19 = vld [vmem:[%s3848_s9 + $0xc8] sm:$0xff]  ;;  %v2037_v29 = vld [vmem:[%s3848_s9 + $0x40] sm:$0xff] }
 0x19f   : > { %v1893_v38 = vadd.f32 %v1886_v20, %v1874_v57  ;;  %v1894_v43 = vadd.f32 %v1888_v49, %v1875_v44  ;;  %v1946_v8 = vrot.slane %v1942_v22, 2  ;;  %v2745_v1 = vmov 0   ;;  %v1980_v20 = vld [vmem:[#allocation2] sm:$0x1]  ;;  %2622 = vmatpush3.msra.mxu1 %v2044_v42  ;;  %v2042_v44 = vld [vmem:[%s3848_s9 + $0x68] sm:$0xff]  ;;  %v2506_v49 = vld [vmem:[%s3848_s9 + $0xd8] sm:$0xff] }
 0x1a0   : > { %v1876_v7 = vadd.f32 %v1870_v63, %v1854_v34  ;;  %2711 = vset.pattern.permute.xlu0 %v2745_v1  ;;  %v2510_v34 = vld [vmem:[%s3848_s9 + $0xf8] sm:$0xff]  ;;  %v2508_v63 = vld [vmem:[%s3848_s9 + $0xe8] sm:$0xff]  ;;  %v2002_v1 = vld [vmem:[%s3846_s7 + $0x1] sm:$0x1] }
 0x1a1   : > { %v3619_v18 = vadd.f32 %v2491_v62, %v1893_v38  ;;  %v3629_v52 = vadd.f32 %v2491_v62, %v1894_v43  ;;  %v1947_v36 = vsel %vm440_vm1, %v1945_v60, %v1946_v8  ;;  %2586 = vmatprep.subr.mxu0 %v2510_v34  ;;  %v2043_v38 = vld [vmem:[%s3848_s9 + $0x70] sm:$0xff]  ;;  %v2038_v22 = vld [vmem:[%s3848_s9 + $0x48] sm:$0xff] }
 0x1a2   : > { %v1895_v9 = vadd.f32 %v1887_v21, %v1876_v7  ;;  %2587 = vmatpush3.msra.mxu0 %v2510_v34  ;;  %2623 = vmatprep.subr.mxu1 %v2043_v38  ;;  %v2041_v7 = vld [vmem:[%s3848_s9 + $0x60] sm:$0xff]  ;;  %v2505_v43 = vld [vmem:[%s3848_s9 + $0xd0] sm:$0xff] }
 0x1a3   : > { %v1919_v24 = vmul.f32 %v2493_v17, %v3619_v18  ;;  %v1920_v55 = vmul.f32 %v2493_v17, %v3629_v52  ;;  %2624 = vmatpush3.msra.mxu1 %v2043_v38 }
 0x1a4   : > { %v3632_v35 = vadd.f32 %v2491_v62, %v1895_v9  ;;  %v2509_v62 = vld [vmem:[%s3848_s9 + $0xf0] sm:$0xff]  ;;  %2625 = vmatprep.subr.mxu1 %v2042_v44 }
 0x1a5   : > { %v1926_v0 = vrot.slane %v1920_v55, 1  ;;  %v1925_v56 = vrot.slane %v1919_v24, 1  ;;  %2588 = vmatprep.subr.mxu0 %v2509_v62  ;;  %2626 = vmatpush3.msra.mxu1 %v2042_v44  ;;  %v2039_v9 = vld [vmem:[%s3848_s9 + $0x50] sm:$0xff]  ;;  %v2503_v24 = vld [vmem:[%s3848_s9 + $0xc0] sm:$0xff]  ;;  %v2502_v55 = vld [vmem:[%s3848_s9 + $0xb8] sm:$0xff] }
 0x1a6   : > { %v1921_v13 = vmul.f32 %v2493_v17, %v3632_v35  ;;  %2589 = vmatpush3.msra.mxu0 %v2509_v62  ;;  %v2040_v17 = vld [vmem:[%s3848_s9 + $0x58] sm:$0xff]  ;;  %2627 = vmatprep.subr.mxu1 %v2041_v7 }
 0x1a7   : > { %v1927_v16 = vsel %vm419_vm0, %v1925_v56, %v1926_v0  ;;  %2590 = vmatprep.subr.mxu0 %v2508_v63  ;;  %2628 = vmatpush3.msra.mxu1 %v2041_v7  ;;  %v2034_v56 = vld [vmem:[%s3848_s9 + $0x28] sm:$0xff] }
 0x1a8   : > { %v1928_v58 = vrot.slane %v1921_v13, 1  ;;  %v1933_v41 = vadd.f32 %v1927_v16, %v1911_v37  ;;  %2591 = vmatpush3.msra.mxu0 %v2508_v63  ;;  %2629 = vmatprep.subr.mxu1 %v2040_v17  ;;  %v2036_v13 = vld [vmem:[%s3848_s9 + $0x38] sm:$0xff]  ;;  %v2033_v37 = vld [vmem:[%s3848_s9 + $0x20] sm:$0xff]  ;;  %v2497_v16 = vld [vmem:[%s3848_s9 + $0x90] sm:$0xff] }
 0x1a9   : > { %2592 = vmatprep.subr.mxu0 %v2507_v2  ;;  %2630 = vmatpush3.msra.mxu1 %v2040_v17 }
 0x1aa   : > { %v1929_v33 = vsel %vm419_vm0, %v1926_v0, %v1928_v58  ;;  %v1935_v27 = vadd.f32 %v1928_v58, %v1913_v61  ;;  %v1951_v3 = vadd.f32 %v1945_v60, %v1933_v41  ;;  %2593 = vmatpush3.msra.mxu0 %v2507_v2  ;;  %2631 = vmatprep.subr.mxu1 %v2039_v9  ;;  %v2501_v60 = vld [vmem:[%s3848_s9 + $0xb0] sm:$0xff]  ;;  %v2500_v0 = vld [vmem:[%s3848_s9 + $0xa8] sm:$0xff]  ;;  %v2499_v58 = vld [vmem:[%s3848_s9 + $0xa0] sm:$0xff] }
 0x1ab   : > { %v1934_v6 = vadd.f32 %v1929_v33, %v1912_v26  ;;  %2594 = vmatprep.subr.mxu0 %v2506_v49  ;;  %2632 = vmatpush3.msra.mxu1 %v2039_v9  ;;  %v2498_v61 = vld [vmem:[%s3848_s9 + $0x98] sm:$0xff]  ;;  %v2031_v33 = vld [vmem:[%s3848_s9 + $0x10] sm:$0xff]  ;;  %v2030_v41 = vld [vmem:[%s3848_s9 + $0x8] sm:$0xff] }
 0x1ac   : > { %v1955_v5 = vsel %vm1954_vm6, %v1951_v3, 0.0  ;;  %v1953_v11 = vadd.f32 %v1946_v8, %v1935_v27  ;;  %2595 = vmatpush3.msra.mxu0 %v2506_v49  ;;  %2633 = vmatprep.subr.mxu1 %v2038_v22  ;;  %v2035_v8 = vld [vmem:[%s3848_s9 + $0x30] sm:$0xff]  ;;  %v2032_v26 = vld [vmem:[%s3848_s9 + $0x18] sm:$0xff]  ;;  %v2495_v27 = vld [vmem:[%s3848_s9 + $0x80] sm:$0xff] }
 0x1ad   : > { %v1952_v40 = vadd.f32 %v1947_v36, %v1934_v6  ;;  %1956 = vadd.xlane.f32.xlu0 %v1955_v5  ;;  %2596 = vmatprep.subr.mxu0 %v2505_v43  ;;  %v2496_v36 = vld [vmem:[%s3848_s9 + $0x88] sm:$0xff]  ;;  %v2029_v6 = vld [vmem:[%s3848_s9] sm:$0xff]  ;;  %v3747_v3 = vld [vmem:[%s3848_s9 + $0x178] sm:$0xff] }
 0x1ae   : > { %v1960_v48 = vsel %vm440_vm1, %v1953_v11, 0.0  ;;  %2597 = vmatpush3.msra.mxu0 %v2505_v43  ;;  %2634 = vmatpush3.msra.mxu1 %v2038_v22 }
 0x1af   : > { %1958 = vadd.xlane.f32.xlu1 %v1952_v40  ;;  %2598 = vmatprep.subr.mxu0 %v2504_v19  ;;  %v1989_v40 = vlaneseq }
 0x1b0   : > { %2599 = vmatpush3.msra.mxu0 %v2504_v19  ;;  %2635 = vmatprep.subr.mxu1 %v2037_v29 }
 0x1b1   : > { %1961 = vadd.xlane.f32.xlu0 %v1960_v48  ;;  %2600 = vmatprep.subr.mxu0 %v2503_v24  ;;  %v1990_v5 = vshrl.u32 %v1989_v40, 7  ;;  %v1983_v48 = vld [vmem:[%s3846_s7] sm:$0x1] }
 0x1b2   : > { %2601 = vmatpush3.msra.mxu0 %v2503_v24  ;;  %2636 = vmatpush3.msra.mxu1 %v2037_v29  ;;  %v2515_v40 = vld [vmem:[%s3848_s9 + $0x120] sm:$0xff] }
 0x1b3   : > { %2602 = vmatprep.subr.mxu0 %v2502_v55  ;;  %2637 = vmatprep.subr.mxu1 %v2036_v13  ;;  %v1991_v11 = vsub.s32 0, %v1990_v5  ;;  %v2514_v5 = vld [vmem:[%s3848_s9 + $0x118] sm:$0xff] }
 0x1b4   : > { %2603 = vmatpush3.msra.mxu0 %v2502_v55  ;;  %2638 = vmatpush3.msra.mxu1 %v2036_v13 }
 0x1b5   : > { %2604 = vmatprep.subr.mxu0 %v2501_v60  ;;  %2639 = vmatprep.subr.mxu1 %v2035_v8 }
 0x1b6   : > { %2605 = vmatpush3.msra.mxu0 %v2501_v60  ;;  %2640 = vmatpush3.msra.mxu1 %v2035_v8 }
 0x1b7   : > { %2606 = vmatprep.subr.mxu0 %v2500_v0  ;;  %2641 = vmatprep.subr.mxu1 %v2034_v56 }
 0x1b8   : > { %2607 = vmatpush3.msra.mxu0 %v2500_v0  ;;  %2642 = vmatpush3.msra.mxu1 %v2034_v56 }
 0x1b9   : > { %2608 = vmatprep.subr.mxu0 %v2499_v58  ;;  %2643 = vmatprep.subr.mxu1 %v2033_v37 }
 0x1ba   : > { %2609 = vmatpush3.msra.mxu0 %v2499_v58  ;;  %2644 = vmatpush3.msra.mxu1 %v2033_v37 }
 0x1bb   : > { %2610 = vmatprep.subr.mxu0 %v2498_v61  ;;  %2645 = vmatprep.subr.mxu1 %v2032_v26 }
 0x1bc   : > { %2611 = vmatpush3.msra.mxu0 %v2498_v61  ;;  %2646 = vmatpush3.msra.mxu1 %v2032_v26  ;;  %v2523_v26 = vld [vmem:[%s3848_s9 + $0x160] sm:$0xff] }
 0x1bd   : > { %2612 = vmatprep.subr.mxu0 %v2497_v16  ;;  %2647 = vmatprep.subr.mxu1 %v2031_v33 }
 0x1be   : > { %2613 = vmatpush3.msra.mxu0 %v2497_v16  ;;  %2648 = vmatpush3.msra.mxu1 %v2031_v33  ;;  %v2522_v16 = vld [vmem:[%s3848_s9 + $0x158] sm:$0xff]  ;;  %v2521_v33 = vld [vmem:[%s3848_s9 + $0x150] sm:$0xff] }
 0x1bf   : > { %2614 = vmatprep.subr.mxu0 %v2496_v36  ;;  %2649 = vmatprep.subr.mxu1 %v2030_v41 }
 0x1c0   : > { %2615 = vmatpush3.msra.mxu0 %v2496_v36  ;;  %2650 = vmatpush3.msra.mxu1 %v2030_v41  ;;  %v2520_v36 = vld [vmem:[%s3848_s9 + $0x148] sm:$0xff]  ;;  %v2519_v41 = vld [vmem:[%s3848_s9 + $0x140] sm:$0xff] }
 0x1c1   : > { %2616 = vmatprep.subr.mxu0 %v2495_v27  ;;  %2651 = vmatprep.subr.mxu1 %v2029_v6 }
 0x1c2   : > { %2617 = vmatpush3.msra.mxu0 %v2495_v27  ;;  %2652 = vmatpush3.msra.mxu1 %v2029_v6  ;;  %v2518_v27 = vld [vmem:[%s3848_s9 + $0x138] sm:$0xff]  ;;  %v2517_v6 = vld [vmem:[%s3848_s9 + $0x130] sm:$0xff] }
 0x1c3   : > { %2656 = vmatprep.subr.mxu0 %v3747_v3 }
 0x236   : > { %v1957_v15 = vpop.xlane.xlu0 %1956 }
 0x237   : > { %v1966_v31 = vrot.slane %v1957_v15, 6 }
 0x238   : > { %v1959_v47 = vpop.xlane.xlu1 %1958 }
 0x239   : > { %v1967_v10 = vrot.slane %v1959_v47, 6  ;;  %v2012_v47 = vld [vmem:[%s3846_s7 + $0x2] sm:$0x1] }
 0x23a   : > { %v1962_v54 = vpop.xlane.xlu0 %1961 }
 0x23b   : > { %v1969_v51 = vrot.slane %v1962_v54, 6  ;;  %v1968_v53 = vsel %vm907_vm4, %v1966_v31, %v1967_v10  ;;  %v1994_v31 = vld [vmem:[%s3847_s8] sm:$0x1]  ;;  %v2004_v54 = vld [vmem:[%s3847_s8 + $0x1] sm:$0x1] }
 0x23d   : > { %v1970_v25 = vsel %vm907_vm4, %v1967_v10, %v1969_v51  ;;  %v2014_v51 = vld [vmem:[%s3847_s8 + $0x2] sm:$0x1] }
 0x23e   : > { %v1973_v32 = vadd.f32 %v1970_v25, %v1968_v53 }
 0x240   : > { %v1974_v23 = vrot.slane %v1973_v32, 4 }
 0x242   : > { %v1975_v50 = vadd.f32 %v1974_v23, %v1973_v32 }
 0x244   : > { %v1976_v21 = vrot.slane %v1975_v50, 2 }
 0x246   : > { %v1977_v39 = vadd.f32 %v1976_v21, %v1975_v50 }
 0x248   : > { %v1978_v12 = vrot.slane %v1977_v39, 1 }
 0x24a   : > { %v1979_v4 = vadd.f32 %v1978_v12, %v1977_v39 }
 0x24c   : > { %v1981_v57 = vadd.f32 %v1980_v20, %v1979_v4 }
 0x24e   : > { %v1982_v45 = vmax.f32 %v1981_v57, 0.0 }
 0x250   : > { %1986 = vperm.xlu0 %2711, %v1982_v45  }
 0x2cb   : > { %v1987_v15 = vpop.permute.xlu0 %1986 }
 0x2cc   : > { %v1992_v10 = vrot.slane %v1987_v15, %v1991_v11 }
 0x2ce   : > { %v1993_v53 = vmul.f32 %v1992_v10, %v1983_v48  ;;  %v2003_v25 = vmul.f32 %v2002_v1, %v1992_v10  ;;  %v2013_v32 = vmul.f32 %v2012_v47, %v1992_v10  ;;  %v2512_v48 = vld [vmem:[%s3848_s9 + $0x108] sm:$0xff]  ;;  %v2511_v1 = vld [vmem:[%s3848_s9 + $0x100] sm:$0xff] }
 0x2d0   : > { %v1995_v23 = vadd.f32 %v1994_v31, %v1993_v53  ;;  %v2005_v50 = vadd.f32 %v2004_v54, %v2003_v25  ;;  %v2015_v21 = vadd.f32 %v2014_v51, %v2013_v32  ;;  %v2527_v25 = vld [vmem:[%s3849_s10] ss:$0 sm:$0xff] }
 0x2d2   : > { %v1996_v39 = vsub.f32 0.0, %v1995_v23  ;;  %v2006_v12 = vsub.f32 0.0, %v2005_v50  ;;  %v2016_v20 = vsub.f32 0.0, %v2015_v21 }
 0x2d4   : > { %v1997_v4 = vmul.f32 1.442695, %v1996_v39  ;;  %v2007_v57 = vmul.f32 1.442695, %v2006_v12  ;;  %v2017_v45 = vmul.f32 1.442695, %v2016_v20 }
 0x2d6   : > { %2712 = vpow2.f32 %v1997_v4 }
 0x2d7   : > { %2714 = vpow2.f32 %v2007_v57 }
 0x2d8   : > { %2716 = vpow2.f32 %v2017_v45 }
 0x2e3   : > { %v2713_v34 = vpop.eup %2712 }
 0x2e4   : > { %v2715_v42 = vpop.eup %2714  ;;  %v1999_v62 = vadd.f32 1.0, %v2713_v34 }
 0x2e5   : > { %v2717_v38 = vpop.eup %2716  ;;  %v2009_v63 = vadd.f32 1.0, %v2715_v42 }
 0x2e6   : > { %2718 = vrcp.f32 %v1999_v62  ;;  %v2019_v44 = vadd.f32 1.0, %v2717_v38 }
 0x2e7   : > { %2720 = vrcp.f32 %v2009_v63 }
 0x2e8   : > { %2722 = vrcp.f32 %v2019_v44 }
 0x2f3   : > { %v2719_v2 = vpop.eup %2718 }
 0x2f4   : > { %v2721_v7 = vpop.eup %2720  ;;  %v2025_v49 = vrot.slane %v2719_v2, %v1991_v11 }
 0x2f5   : > { %v2723_v17 = vpop.eup %2722  ;;  %v2048_v43 = vrot.slane %v2721_v7, %v1991_v11 }
 0x2f6   : > { %v2026_v9 = vmul.f32 %v2025_v49, %v3884_v28  ;;  %v2027_v19 = vmul.f32 %v2025_v49, %v3886_v30  ;;  %v2028_v22 = vmul.f32 %v2025_v49, %v3885_v14  ;;  %v2242_v0 = vrot.slane %v2723_v17, %v1991_v11  ;;  %v2524_v14 = vld [vmem:[%s3848_s9 + $0x168] sm:$0xff]  ;;  %v2513_v11 = vld [vmem:[%s3848_s9 + $0x110] sm:$0xff] }
 0x2f7   : > { %v2049_v24 = vmul.f32 %v2048_v43, %v3619_v18  ;;  %v2050_v29 = vmul.f32 %v2048_v43, %v3629_v52  ;;  %v2051_v55 = vmul.f32 %v2048_v43, %v3632_v35  ;;  %v2525_v52 = vld [vmem:[%s3848_s9 + $0x170] sm:$0xff] }
 0x2f8   : > { %v2157_v13 = vrot.slane %v2026_v9, 6  ;;  %v2158_v60 = vrot.slane %v2027_v19, 6  ;;  %v2160_v8 = vrot.slane %v2028_v22, 6  ;;  %v2243_v35 = vmul.f32 %v3622_v59, %v2242_v0 }
 0x2f9   : > { %v2072_v56 = vrot.slane %v2049_v24, 7  ;;  %v2073_v58 = vrot.slane %v2050_v29, 7  ;;  %v2075_v37 = vrot.slane %v2051_v55, 7  ;;  %v2244_v47 = vmul.f32 %v3626_v46, %v2242_v0 }
 0x2fa   : > { %v2159_v61 = vsel %vm907_vm4, %v2157_v13, %v2158_v60  ;;  %v2161_v28 = vsel %vm907_vm4, %v2158_v60, %v2160_v8 }
 0x2fb   : > { %v2074_v30 = vsel %vm1025_vm5, %v2072_v56, %v2073_v58  ;;  %2653 = vmatprep.mubr.f32.mxu1 %v2159_v61  ;;  %v2076_v18 = vsel %vm1025_vm5, %v2073_v58, %v2075_v37 }
 0x2fc   : > { %2618 = vmatprep.mubr.f32.mxu0 %v2074_v30  ;;  %2654 = vmatmul.mubr.f32.vlgmr.msra.gmra.mxu1 %v2161_v28 }
 0x2fd   : > { %2619 = vmatmul.mubr.f32.vlgmr.msra.gmra.mxu0 %v2076_v18 }
 0x2fe   : > { %2657 = vmatpush3.msra.mxu0 %v3747_v3  ;;  %2688 = vmatprep.mubr.f32.mxu0 %v2243_v35  ;;  %v2516_v3 = vld [vmem:[%s3848_s9 + $0x128] sm:$0xff] }
 0x2ff   : > { %2658 = vmatprep.subr.mxu0 %v2525_v52 }
 0x300   : > { %2659 = vmatpush3.msra.mxu0 %v2525_v52 }
 0x301   : > { %2660 = vmatprep.subr.mxu0 %v2524_v14 }
 0x302   : > { %2661 = vmatpush3.msra.mxu0 %v2524_v14 }
 0x303   : > { %2662 = vmatprep.subr.mxu0 %v2523_v26 }
 0x304   : > { %2663 = vmatpush3.msra.mxu0 %v2523_v26 }
 0x305   : > { %2664 = vmatprep.subr.mxu0 %v2522_v16 }
 0x306   : > { %2665 = vmatpush3.msra.mxu0 %v2522_v16 }
 0x307   : > { %2666 = vmatprep.subr.mxu0 %v2521_v33 }
 0x308   : > { %2667 = vmatpush3.msra.mxu0 %v2521_v33 }
 0x309   : > { %2668 = vmatprep.subr.mxu0 %v2520_v36 }
 0x30a   : > { %2669 = vmatpush3.msra.mxu0 %v2520_v36 }
 0x30b   : > { %2670 = vmatprep.subr.mxu0 %v2519_v41 }
 0x30c   : > { %2671 = vmatpush3.msra.mxu0 %v2519_v41 }
 0x30d   : > { %2672 = vmatprep.subr.mxu0 %v2518_v27 }
 0x30e   : > { %2673 = vmatpush3.msra.mxu0 %v2518_v27 }
 0x30f   : > { %2674 = vmatprep.subr.mxu0 %v2517_v6 }
 0x310   : > { %2675 = vmatpush3.msra.mxu0 %v2517_v6 }
 0x311   : > { %2676 = vmatprep.subr.mxu0 %v2516_v3 }
 0x312   : > { %2677 = vmatpush3.msra.mxu0 %v2516_v3 }
 0x313   : > { %2678 = vmatprep.subr.mxu0 %v2515_v40 }
 0x314   : > { %2679 = vmatpush3.msra.mxu0 %v2515_v40 }
 0x315   : > { %2680 = vmatprep.subr.mxu0 %v2514_v5 }
 0x316   : > { %2681 = vmatpush3.msra.mxu0 %v2514_v5 }
 0x317   : > { %2682 = vmatprep.subr.mxu0 %v2513_v11 }
 0x318   : > { %2683 = vmatpush3.msra.mxu0 %v2513_v11 }
 0x319   : > { %2684 = vmatprep.subr.mxu0 %v2512_v48 }
 0x31a   : > { %2685 = vmatpush3.msra.mxu0 %v2512_v48 }
 0x31b   : > { %2686 = vmatprep.subr.mxu0 %v2511_v1 }
 0x31c   : > { %2687 = vmatpush3.msra.mxu0 %v2511_v1 }
 0x31d   : > { %2689 = vmatmul.mubr.f32.vlgmr.msra.gmra.mxu0 %v2244_v47 }
 0x3bc   : > { %v2655_v10 = vpop.f32.mrf.mxu1 }
 0x3bd   : > { %v2620_v15 = vpop.f32.mrf.mxu0 }
 0x3be   : > { %v2230_v54 = vpop.f32.mrf.mxu1  ;;  %v2236_v51 = vadd.f32 %v2655_v10, %v2620_v15 }
 0x3bf   : > { %v2145_v31 = vpop.f32.mrf.mxu0 }
 0x3c0   : > { %v2231_v32 = vadd.f32 %v2230_v54, %v2145_v31 }
 0x3dd   : > { %v2690_v53 = vpop.f32.mrf.mxu0 }
 0x3de   : > { %v2338_v23 = vadd.f32 %v2690_v53, %v2236_v51 }
 0x3df   : > { %v2328_v50 = vpop.f32.mrf.mxu0 }
 0x3e0   : > { %v2347_v21 = vadd.f32 %v2527_v25, %v2338_v23  ;;  %v2337_v39 = vadd.f32 %v2328_v50, %v2231_v32 }
 0x3e2   : > { %v2349_v12 = vmul.f32 %v3626_v46, %v2347_v21  ;;  %v2346_v20 = vadd.f32 %v2527_v25, %v2337_v39 }
 0x3e4   : > { %2351 = vst [vmem:[%s388_s28 + $0x8] sm:$0xff] %v2349_v12  ;;  %v2348_v4 = vmul.f32 %v3622_v59, %v2346_v20 }
 0x3e6   : > { %2350 = vst [vmem:[%s388_s28] sm:$0xff] %v2348_v4 }
 0x3e7 PF: > { %s23_s19 = sadd.s32 1, %s2732_s19  }
 0x3e8   : > { %p20_p4 = scmp.ge.s32.totalorder %s23_s19, 4  }
 0x3ea   :  { %22 = sbr.rel (!%p20_p4) target bundleno = 3 (0x3), region = 96 }

</bundles_post_ra>
